<compile_context>
chip_gen: v7x
topology: tpu7x:2x2x1
jax: 0.10.0
libtpu: 0.0.40
codegen_flags: <defaults>
</compile_context>

<pallas_src>
import numpy as np
import jax
import jax.numpy as jnp
from jax.experimental import pallas as pl
from jax.experimental.pallas import tpu as pltpu

# ----------------------------- model hyperparams -----------------------------
N_TW = 30          # sequence length (time window)
N_FT = 14          # input channels
FN = 10            # conv channels
FL = 10            # conv kernel size
NEURONS_FC = 100
BATCH = 2

LANE = 128
ROW_ALIGN = 16     # sublane tile for bf16 activations (also satisfies f32 (8,·))
TILE_B_MAX = 512   # max batch rows per grid step
MIN_GRID_STEPS = 4  # keep >= 2 tiles per TensorCore on v7x (2 TC / chip)


def _round_up(n, m):
    return ((n + m - 1) // m) * m


# lane-dense (128-multiple) padded widths
X_IN = N_FT * N_TW                   # 420
X_PAD = _round_up(X_IN, LANE)        # 512
H_IN = FN * N_TW                     # 300
H_PAD = _round_up(H_IN, LANE)        # 384
T_IN = 1 * N_TW                      # 30   (conv_high output / fc1 input)
T_PAD = _round_up(T_IN, LANE)        # 128
F_PAD = _round_up(NEURONS_FC, LANE)  # 128
O_PAD = LANE                         # fc2 output column padded 1 -> 128

# -------- coalesced slab layout (row offsets are all 128-aligned) ------------
W_COLS = H_PAD                       # 384: widest layer output
R_CONV1 = 0                          # (512, 384)
R_CONV2 = R_CONV1 + X_PAD            # 512
R_CONV3 = R_CONV2 + H_PAD            # 896
R_CONV4 = R_CONV3 + H_PAD            # 1280
R_CONVH = R_CONV4 + H_PAD            # 1664
R_FC1 = R_CONVH + H_PAD              # 2048
R_FC2 = R_FC1 + T_PAD                # 2176
W_ROWS = R_FC2 + F_PAD               # 2304
BIAS_ROWS = 8                        # 7 layers + 1 zero pad row

# (row_offset, contraction_rows, out_cols, bias_row, apply_tanh)
_LAYERS = (
    (R_CONV1, X_PAD, H_PAD, 0, True),   # conv1
    (R_CONV2, H_PAD, H_PAD, 1, True),   # conv2
    (R_CONV3, H_PAD, H_PAD, 2, True),   # conv3
    (R_CONV4, H_PAD, H_PAD, 3, True),   # conv4
    (R_CONVH, H_PAD, T_PAD, 4, True),   # conv_high
    (R_FC1,  T_PAD, F_PAD, 5, True),    # fc1   (flatten = no-op, dropout = id)
    (R_FC2,  F_PAD, O_PAD, 6, False),   # fc2   (no activation)
)


# ----------------------------- parameter init --------------------------------
def xavier_uniform(key, shape, fan_in, fan_out):
    bound = np.sqrt(6.0 / (fan_in + fan_out))
    return jax.random.uniform(key, shape, minval=-bound, maxval=bound,
                              dtype=jnp.float32)


def init_params(key):
    ks = jax.random.split(key, 7)
    params = {}
    # Conv1d weights: (C_out, C_in, K); xavier fan_in = C_in*K, fan_out = C_out*K
    params["conv1_w"] = xavier_uniform(ks[0], (FN, N_FT, FL), N_FT * FL, FN * FL)
    params["conv2_w"] = xavier_uniform(ks[1], (FN, FN, FL), FN * FL, FN * FL)
    params["conv3_w"] = xavier_uniform(ks[2], (FN, FN, FL), FN * FL, FN * FL)
    params["conv4_w"] = xavier_uniform(ks[3], (FN, FN, FL), FN * FL, FN * FL)
    params["convh_w"] = xavier_uniform(ks[4], (1, FN, 3), FN * 3, 1 * 3)
    # Linear weights stored transposed (in, out) relative to PyTorch's (out, in)
    params["fc1_w"] = xavier_uniform(ks[5], (N_TW, NEURONS_FC), N_TW, NEURONS_FC)
    params["fc2_w"] = xavier_uniform(ks[6], (NEURONS_FC, 1), NEURONS_FC, 1)
    # biases zero-initialized (matches _initialize_weights)
    params["conv1_b"] = jnp.zeros((FN,), jnp.float32)
    params["conv2_b"] = jnp.zeros((FN,), jnp.float32)
    params["conv3_b"] = jnp.zeros((FN,), jnp.float32)
    params["conv4_b"] = jnp.zeros((FN,), jnp.float32)
    params["convh_b"] = jnp.zeros((1,), jnp.float32)
    params["fc1_b"] = jnp.zeros((NEURONS_FC,), jnp.float32)
    params["fc2_b"] = jnp.zeros((1,), jnp.float32)
    return params


# --------------- conv1d('same') -> padded Toeplitz matmul (build-time) --------
def conv_to_toeplitz(w, L, rows_pad, cols_pad):
    """Lower a PyTorch Conv1d (padding='same', cross-correlation) to a dense
    matrix M (rows_pad, cols_pad) whose top-left (C_in*L, C_out*L) block gives
        y_flat = x_flat @ M   with x_flat = x.reshape(B, C_in*L) (row-major NCL).
    PyTorch 'same': left pad = (K-1)//2, right pad = K-1-left. Padded rows/cols
    are zero, so lane-padding stays exactly zero through the network."""
    w = np.asarray(w, dtype=np.float32)
    c_out, c_in, k = w.shape
    left = (k - 1) // 2
    m = np.zeros((rows_pad, cols_pad), dtype=np.float32)
    for co in range(c_out):
        for ci in range(c_in):
            for j in range(k):
                for t in range(L):
                    s = t + j - left          # source position in unpadded input
                    if 0 <= s < L:
                        m[ci * L + s, co * L + t] = w[co, ci, j]
    return m


def _pad_mat(w, rows_pad, cols_pad):
    w = np.asarray(w, dtype=np.float32)
    m = np.zeros((rows_pad, cols_pad), dtype=np.float32)
    m[: w.shape[0], : w.shape[1]] = w
    return m


def build_dcnn(params, compute_dtype=jnp.bfloat16):
    """One-time lowering of all layer weights/biases into TWO coalesced slabs:
      * w_slab (W_ROWS, W_COLS) in compute_dtype (bf16: native MXU rate, half
        the DMA bytes) — one HBM->VMEM DMA per pallas_call.
      * b_slab (BIAS_ROWS, W_COLS) in f32 (bias add / tanh path stays f32)."""
    def pad_cols(m):
        return np.pad(m, ((0, 0), (0, W_COLS - m.shape[1])))

    w_blocks = [
        conv_to_toeplitz(params["conv1_w"], N_TW, X_PAD, H_PAD),
        conv_to_toeplitz(params["conv2_w"], N_TW, H_PAD, H_PAD),
        conv_to_toeplitz(params["conv3_w"], N_TW, H_PAD, H_PAD),
        conv_to_toeplitz(params["conv4_w"], N_TW, H_PAD, H_PAD),
        conv_to_toeplitz(params["convh_w"], N_TW, H_PAD, T_PAD),
        _pad_mat(params["fc1_w"], T_PAD, F_PAD),
        _pad_mat(params["fc2_w"], F_PAD, O_PAD),
    ]
    w_slab = np.concatenate([pad_cols(b) for b in w_blocks], axis=0)
    assert w_slab.shape == (W_ROWS, W_COLS), w_slab.shape

    b_slab = np.zeros((BIAS_ROWS, W_COLS), dtype=np.float32)
    b_slab[0, :H_IN] = np.repeat(np.asarray(params["conv1_b"], np.float32), N_TW)
    b_slab[1, :H_IN] = np.repeat(np.asarray(params["conv2_b"], np.float32), N_TW)
    b_slab[2, :H_IN] = np.repeat(np.asarray(params["conv3_b"], np.float32), N_TW)
    b_slab[3, :H_IN] = np.repeat(np.asarray(params["conv4_b"], np.float32), N_TW)
    b_slab[4, :T_IN] = np.repeat(np.asarray(params["convh_b"], np.float32), N_TW)
    b_slab[5, :NEURONS_FC] = np.asarray(params["fc1_b"], np.float32)
    b_slab[6, :1] = np.asarray(params["fc2_b"], np.float32)

    return jnp.asarray(w_slab, compute_dtype), jnp.asarray(b_slab, jnp.float32)


# --------------------------- generation-dependent knobs ------------------------
def _use_bf16_act():
    """bf16 tanh/activation chain only on chips with bf16 VPU/EUP (v6e, v7x+).
    v5e and older stay f32 to avoid up/down-convert regressions."""
    try:
        kind = jax.devices()[0].device_kind.lower()
    except Exception:
        return False
    if "tpu" not in kind:
        return False
    return not any(v in kind for v in ("v2", "v3", "v4", "v5"))


def _choose_tiling(b):
    """Pick (tile_b, padded_batch). Tiny batches: one tile. Large batches:
    >= MIN_GRID_STEPS tiles (megacore sharding on v7x) with tile_b >= 128 so
    duplicated weight-slab DMA per core stays amortized; tile_b <= 512 keeps
    VMEM tiny on every generation."""
    pbr = _round_up(b, ROW_ALIGN)
    if pbr <= 128:
        tile_b = pbr
    else:
        tile_b = max(128, min(TILE_B_MAX,
                              _round_up(-(-pbr // MIN_GRID_STEPS), ROW_ALIGN)))
    pb = _round_up(pbr, tile_b)
    return tile_b, pb


# ------------------------------- Pallas kernel --------------------------------
def _make_kernel(bf16_act):
    bf16 = jnp.bfloat16

    def dcnn_kernel(x_ref, w_ref, b_ref, out_ref):
        h = x_ref[...]                                    # (tile_b, X_PAD) bf16
        for (r0, rows, cols, brow, act) in _LAYERS:       # fully unrolled
            w = w_ref[r0:r0 + rows, :cols]                # static VMEM view
            y = jnp.dot(h.astype(bf16), w,                # MXU, f32 accumulate
                        preferred_element_type=jnp.float32)
            y = y + b_ref[brow:brow + 1, :cols]           # f32 bias add
            if act:
                # v6e/v7x: tanh in bf16 (EUP bf16, feeds next dot directly);
                # v5e: stay f32 (no bf16 VPU/EUP), cast happens at next dot.
                h = jnp.tanh(y.astype(bf16)) if bf16_act else jnp.tanh(y)
            else:
                h = y                                     # fc2: no activation
        # flatten is a no-op in this layout; dropout is identity (eval mode)
        out_ref[...] = h                                  # (tile_b, O_PAD) f32
    return dcnn_kernel


# ------------------------------- forward wrapper -------------------------------
def dcnn_forward(x, w_slab, b_slab):
    """x: (B, N_FT, N_TW) float32 (PyTorch NCL). Returns (B, 1) float32.
    jit-compatible: all weight lowering happened in build_dcnn."""
    b = x.shape[0]
    tile_b, pb = _choose_tiling(b)
    grid = (pb // tile_b,)

    # pad + cast to bf16 in the wrapper: halves the input HBM stream and
    # removes the in-kernel (tile_b, 512) cast pass for layer 1.
    x_flat = x.reshape(b, X_IN).astype(jnp.bfloat16)
    x_pad = jnp.pad(x_flat, ((0, pb - b), (0, X_PAD - X_IN)))

    out = pl.pallas_call(
        _make_kernel(_use_bf16_act()),
        out_shape=jax.ShapeDtypeStruct((pb, O_PAD), jnp.float32),
        grid=grid,
        in_specs=[
            # activation tiles march over the batch grid
            pl.BlockSpec((tile_b, X_PAD), lambda i: (i, 0)),
            # coalesced weight/bias slabs: constant index_map -> fetched once,
            # VMEM-resident across all grid steps (2 DMAs instead of 14)
            pl.BlockSpec((W_ROWS, W_COLS), lambda i: (0, 0)),
            pl.BlockSpec((BIAS_ROWS, W_COLS), lambda i: (0, 0)),
        ],
        out_specs=pl.BlockSpec((tile_b, O_PAD), lambda i: (i, 0)),
        compiler_params=pltpu.CompilerParams(
            dimension_semantics=("parallel",),   # megacore-shardable on v7x
        ),
    )(x_pad, w_slab, b_slab)
    return out[:b, :1]


# --------------------------- pure-JAX reference (check) ------------------------
def dcnn_reference(x, w_slab, b_slab, bf16_act):
    """Mirrors the kernel's exact compute path (same slabs, same dtypes) in
    plain jnp, so the comparison isolates Pallas-lowering correctness."""
    bf16 = jnp.bfloat16
    b = x.shape[0]
    h = jnp.pad(x.reshape(b, X_IN).astype(bf16), ((0, 0), (0, X_PAD - X_IN)))
    for (r0, rows, cols, brow, act) in _LAYERS:
        y = jnp.dot(h.astype(bf16), w_slab[r0:r0 + rows, :cols],
                    preferred_element_type=jnp.float32)
        y = y + b_slab[brow:brow + 1, :cols]
        if act:
            h = jnp.tanh(y.astype(bf16)) if bf16_act else jnp.tanh(y)
        else:
            h = y
    return h[:, :1]


# ------------------------------------ main -------------------------------------
if __name__ == "__main__":
    key = jax.random.PRNGKey(0)
    pkey, xkey = jax.random.split(key)
    params = init_params(pkey)

    # Build-time lowering: runs exactly once, outside any traced region.
    w_slab, b_slab = build_dcnn(params, compute_dtype=jnp.bfloat16)

    x = jax.random.normal(xkey, (BATCH, N_FT, N_TW), dtype=jnp.float32)

    forward = jax.jit(dcnn_forward)
    y = forward(x, w_slab, b_slab)
    jax.block_until_ready(y)
    assert y.shape == (BATCH, 1), y.shape

    y_ref = dcnn_reference(x, w_slab, b_slab, _use_bf16_act())
    np.testing.assert_allclose(np.asarray(y), np.asarray(y_ref),
                               rtol=2e-2, atol=2e-2)
    print("KERNEL_OK")
</pallas_src>

<mosaic_0001>
module attributes {stable_mosaic.version = 11 : i64} {
  func.func @dcnn_kernel(%arg0: i32, %arg1: memref<16x512xbf16, #tpu.memory_space<vmem>>, %arg2: memref<2304x384xbf16, #tpu.memory_space<vmem>>, %arg3: memref<8x384xf32, #tpu.memory_space<vmem>>, %arg4: memref<16x128xf32, #tpu.memory_space<vmem>>) attributes {dimension_semantics = [#tpu.dimension_semantics<parallel>], iteration_bounds = array<i64: 1>, scalar_prefetch = 0 : i64, scratch_operands = 0 : i64, tpu.core_type = #tpu.core_type<tc>, window_params = [{transform_indices = @transform_0, window_bounds = array<i64: 16, 512>}, {pipeline_mode = #tpu.pipeline_mode<synchronous>, transform_indices = @transform_1, window_bounds = array<i64: 2304, 384>}, {pipeline_mode = #tpu.pipeline_mode<synchronous>, transform_indices = @transform_2, window_bounds = array<i64: 8, 384>}, {transform_indices = @transform_3, window_bounds = array<i64: 16, 128>}]} {
    %c0 = arith.constant 0 : index
    %c0_0 = arith.constant 0 : index
    %0 = vector.load %arg1[%c0, %c0_0] : memref<16x512xbf16, #tpu.memory_space<vmem>>, vector<16x512xbf16>
    %c0_1 = arith.constant 0 : index
    %c0_2 = arith.constant 0 : index
    %1 = vector.load %arg2[%c0_1, %c0_2] : memref<2304x384xbf16, #tpu.memory_space<vmem>>, vector<512x384xbf16>
    %cst = arith.constant dense<0.000000e+00> : vector<16x384xf32>
    %2 = tpu.matmul %0, %1, %cst {dimension_numbers = #tpu.dot_dimension_numbers<[1], [0], [0], [1], [0, 0, 1, 1], [], []>} : vector<16x512xbf16>, vector<512x384xbf16>, vector<16x384xf32> -> vector<16x384xf32>
    %c0_3 = arith.constant 0 : index
    %c0_4 = arith.constant 0 : index
    %3 = vector.load %arg3[%c0_3, %c0_4] : memref<8x384xf32, #tpu.memory_space<vmem>>, vector<1x384xf32>
    %4 = vector.broadcast %3 : vector<1x384xf32> to vector<16x384xf32>
    %5 = arith.addf %2, %4 : vector<16x384xf32>
    %6 = math.tanh %5 : vector<16x384xf32>
    %c512 = arith.constant 512 : index
    %c0_5 = arith.constant 0 : index
    %7 = vector.load %arg2[%c512, %c0_5] : memref<2304x384xbf16, #tpu.memory_space<vmem>>, vector<384x384xbf16>
    %8 = arith.truncf %6 : vector<16x384xf32> to vector<16x384xbf16>
    %cst_6 = arith.constant dense<0.000000e+00> : vector<16x384xf32>
    %9 = tpu.matmul %8, %7, %cst_6 {dimension_numbers = #tpu.dot_dimension_numbers<[1], [0], [0], [1], [0, 0, 1, 1], [], []>} : vector<16x384xbf16>, vector<384x384xbf16>, vector<16x384xf32> -> vector<16x384xf32>
    %c1 = arith.constant 1 : index
    %c0_7 = arith.constant 0 : index
    %10 = vector.load %arg3[%c1, %c0_7] : memref<8x384xf32, #tpu.memory_space<vmem>>, vector<1x384xf32>
    %11 = vector.broadcast %10 : vector<1x384xf32> to vector<16x384xf32>
    %12 = arith.addf %9, %11 : vector<16x384xf32>
    %13 = math.tanh %12 : vector<16x384xf32>
    %c896 = arith.constant 896 : index
    %c0_8 = arith.constant 0 : index
    %14 = vector.load %arg2[%c896, %c0_8] : memref<2304x384xbf16, #tpu.memory_space<vmem>>, vector<384x384xbf16>
    %15 = arith.truncf %13 : vector<16x384xf32> to vector<16x384xbf16>
    %cst_9 = arith.constant dense<0.000000e+00> : vector<16x384xf32>
    %16 = tpu.matmul %15, %14, %cst_9 {dimension_numbers = #tpu.dot_dimension_numbers<[1], [0], [0], [1], [0, 0, 1, 1], [], []>} : vector<16x384xbf16>, vector<384x384xbf16>, vector<16x384xf32> -> vector<16x384xf32>
    %c2 = arith.constant 2 : index
    %c0_10 = arith.constant 0 : index
    %17 = vector.load %arg3[%c2, %c0_10] : memref<8x384xf32, #tpu.memory_space<vmem>>, vector<1x384xf32>
    %18 = vector.broadcast %17 : vector<1x384xf32> to vector<16x384xf32>
    %19 = arith.addf %16, %18 : vector<16x384xf32>
    %20 = math.tanh %19 : vector<16x384xf32>
    %c1280 = arith.constant 1280 : index
    %c0_11 = arith.constant 0 : index
    %21 = vector.load %arg2[%c1280, %c0_11] : memref<2304x384xbf16, #tpu.memory_space<vmem>>, vector<384x384xbf16>
    %22 = arith.truncf %20 : vector<16x384xf32> to vector<16x384xbf16>
    %cst_12 = arith.constant dense<0.000000e+00> : vector<16x384xf32>
    %23 = tpu.matmul %22, %21, %cst_12 {dimension_numbers = #tpu.dot_dimension_numbers<[1], [0], [0], [1], [0, 0, 1, 1], [], []>} : vector<16x384xbf16>, vector<384x384xbf16>, vector<16x384xf32> -> vector<16x384xf32>
    %c3 = arith.constant 3 : index
    %c0_13 = arith.constant 0 : index
    %24 = vector.load %arg3[%c3, %c0_13] : memref<8x384xf32, #tpu.memory_space<vmem>>, vector<1x384xf32>
    %25 = vector.broadcast %24 : vector<1x384xf32> to vector<16x384xf32>
    %26 = arith.addf %23, %25 : vector<16x384xf32>
    %27 = math.tanh %26 : vector<16x384xf32>
    %c1664 = arith.constant 1664 : index
    %c0_14 = arith.constant 0 : index
    %28 = vector.load %arg2[%c1664, %c0_14] : memref<2304x384xbf16, #tpu.memory_space<vmem>>, vector<384x128xbf16>
    %29 = arith.truncf %27 : vector<16x384xf32> to vector<16x384xbf16>
    %cst_15 = arith.constant dense<0.000000e+00> : vector<16x128xf32>
    %30 = tpu.matmul %29, %28, %cst_15 {dimension_numbers = #tpu.dot_dimension_numbers<[1], [0], [0], [1], [0, 0, 1, 1], [], []>} : vector<16x384xbf16>, vector<384x128xbf16>, vector<16x128xf32> -> vector<16x128xf32>
    %c4 = arith.constant 4 : index
    %c0_16 = arith.constant 0 : index
    %31 = vector.load %arg3[%c4, %c0_16] : memref<8x384xf32, #tpu.memory_space<vmem>>, vector<1x128xf32>
    %32 = vector.broadcast %31 : vector<1x128xf32> to vector<16x128xf32>
    %33 = arith.addf %30, %32 : vector<16x128xf32>
    %34 = math.tanh %33 : vector<16x128xf32>
    %c2048 = arith.constant 2048 : index
    %c0_17 = arith.constant 0 : index
    %35 = vector.load %arg2[%c2048, %c0_17] : memref<2304x384xbf16, #tpu.memory_space<vmem>>, vector<128x128xbf16>
    %36 = arith.truncf %34 : vector<16x128xf32> to vector<16x128xbf16>
    %cst_18 = arith.constant dense<0.000000e+00> : vector<16x128xf32>
    %37 = tpu.matmul %36, %35, %cst_18 {dimension_numbers = #tpu.dot_dimension_numbers<[1], [0], [0], [1], [0, 0, 1, 1], [], []>} : vector<16x128xbf16>, vector<128x128xbf16>, vector<16x128xf32> -> vector<16x128xf32>
    %c5 = arith.constant 5 : index
    %c0_19 = arith.constant 0 : index
    %38 = vector.load %arg3[%c5, %c0_19] : memref<8x384xf32, #tpu.memory_space<vmem>>, vector<1x128xf32>
    %39 = vector.broadcast %38 : vector<1x128xf32> to vector<16x128xf32>
    %40 = arith.addf %37, %39 : vector<16x128xf32>
    %41 = math.tanh %40 : vector<16x128xf32>
    %c2176 = arith.constant 2176 : index
    %c0_20 = arith.constant 0 : index
    %42 = vector.load %arg2[%c2176, %c0_20] : memref<2304x384xbf16, #tpu.memory_space<vmem>>, vector<128x128xbf16>
    %43 = arith.truncf %41 : vector<16x128xf32> to vector<16x128xbf16>
    %cst_21 = arith.constant dense<0.000000e+00> : vector<16x128xf32>
    %44 = tpu.matmul %43, %42, %cst_21 {dimension_numbers = #tpu.dot_dimension_numbers<[1], [0], [0], [1], [0, 0, 1, 1], [], []>} : vector<16x128xbf16>, vector<128x128xbf16>, vector<16x128xf32> -> vector<16x128xf32>
    %c6 = arith.constant 6 : index
    %c0_22 = arith.constant 0 : index
    %45 = vector.load %arg3[%c6, %c0_22] : memref<8x384xf32, #tpu.memory_space<vmem>>, vector<1x128xf32>
    %46 = vector.broadcast %45 : vector<1x128xf32> to vector<16x128xf32>
    %47 = arith.addf %44, %46 : vector<16x128xf32>
    %c0_23 = arith.constant 0 : index
    %c0_24 = arith.constant 0 : index
    %48 = vector.load %arg4[%c0_23, %c0_24] : memref<16x128xf32, #tpu.memory_space<vmem>>, vector<16x128xf32>
    tpu.vector_store %arg4[%c0_23, %c0_24], %47 {strides = array<i32>} : memref<16x128xf32, #tpu.memory_space<vmem>>, vector<16x128xf32>,
    return
  }
  func.func @transform_0(%arg0: i32) -> (i32, i32) {
    %c0_i32 = arith.constant 0 : i32
    %c0_i32_0 = arith.constant 0 : i32
    return %arg0, %c0_i32 : i32, i32
  }
  func.func @transform_1(%arg0: i32) -> (i32, i32) {
    %c0_i32 = arith.constant 0 : i32
    %c0_i32_0 = arith.constant 0 : i32
    %c0_i32_1 = arith.constant 0 : i32
    return %c0_i32, %c0_i32_0 : i32, i32
  }
  func.func @transform_2(%arg0: i32) -> (i32, i32) {
    %c0_i32 = arith.constant 0 : i32
    %c0_i32_0 = arith.constant 0 : i32
    %c0_i32_1 = arith.constant 0 : i32
    return %c0_i32, %c0_i32_0 : i32, i32
  }
  func.func @transform_3(%arg0: i32) -> (i32, i32) {
    %c0_i32 = arith.constant 0 : i32
    %c0_i32_0 = arith.constant 0 : i32
    return %arg0, %c0_i32 : i32, i32
  }
}

</mosaic_0001>

<bundles_post_ra>
// kernel: dcnn_forward.1
= control target key start
LH: loop header
LB: loop body
LE: loop exit
PB: predicated region body
PF: predicated region fallthrough
CT: control target
= control target key end

     0   :  { %8 = vsyncpa [#allocation3], 0  ;;  %s4854_s0 = inlined_call_operand.vmem [shape: bf16[16,512], index: 0, kind: input, shape index: {}]   ;;  %s4855_s1 = inlined_call_operand.hbm [shape: bf16[2304,384], index: 1, kind: input, shape index: {}]   ;;  %s4856_s2 = inlined_call_operand.hbm [shape: f32[8,384], index: 2, kind: input, shape index: {}]   ;;  %s4857_s3 = inlined_call_operand.vmem [shape: f32[16,128], index: 3, kind: output, shape index: {}]  }
   0x1   :  { %9 = vsyncpa [#allocation5], 0  ;;  %s4692_s12 = smov [#allocation2]   ;;  %s4644_s16 = scalar_lea.hbm %s4855_s1, 55296 }
   0x2   :  { %s17_s13 = sshll.u32 %s4692_s12, 4  ;;  %p4645_p0 = scmp.ne.s32.totalorder %s4855_s1, %s4644_s16  ;;  %s18_s13 = int_to_ptr.vmem [resolvable:$true] %s17_s13 }
   0x3   :  { %p4648_p1 = scmp.lt.u32.totalorder %s4644_s16, %s4855_s1 }
   0x5   :  { %p4650_p2 = pnand %p4648_p1, %p4645_p0 }
   0x7   :  { %4653 = shalt.err (!%p4650_p2)
}
   0x8   :  { %s4654_s21 = scalar_lea.vmem %s18_s13, 55296  ;;  %p4659_p4 = scmp.lt.s32.totalorder %s18_s13, %s18_s13 }
   0x9   :  { %p4655_p3 = scmp.ne.s32.totalorder %s18_s13, %s4654_s21  ;;  %p4660_p5 = scmp.lt.s32.totalorder %s4654_s21, %s4654_s21 }
   0xb   :  { %p4661_p6 = por %p4660_p5, %p4659_p4 }
   0xd   :  { %p4662_p7 = pnand %p4661_p6, %p4655_p3 }
   0xf   :  { %4665 = shalt.err (!%p4662_p7)
}
  0x10   :  { %s4693_s22 = smov 192   ;;  %s4694_s23 = smov 12  }
  0x11   :  { %23 = dma.hbm_to_vmem [thread:$0]  %s4855_s1, 55296, %s18_s13, [#allocation3], %s4693_s22, %s4693_s22, %s4694_s23  }
  0x12   :  { %s4695_s26 = smov [#allocation4]   ;;  %s4666_s30 = scalar_lea.hbm %s4856_s2, 384 }
  0x13   :  { %s30_s27 = sshll.u32 %s4695_s26, 4  ;;  %p4667_p8 = scmp.ne.s32.totalorder %s4856_s2, %s4666_s30  ;;  %s31_s27 = int_to_ptr.vmem [resolvable:$true] %s30_s27 }
  0x14   :  { %p4670_p9 = scmp.lt.u32.totalorder %s4666_s30, %s4856_s2 }
  0x16   :  { %p4672_p10 = pnand %p4670_p9, %p4667_p8 }
  0x18   :  { %4675 = shalt.err (!%p4672_p10)
}
  0x19   :  { %s4676_s8 = scalar_lea.vmem %s31_s27, 384  ;;  %p4681_p12 = scmp.lt.s32.totalorder %s31_s27, %s31_s27 }
  0x1a   :  { %p4677_p11 = scmp.ne.s32.totalorder %s31_s27, %s4676_s8  ;;  %p4682_p13 = scmp.lt.s32.totalorder %s4676_s8, %s4676_s8 }
  0x1c   :  { %p4683_p0 = por %p4682_p13, %p4681_p12 }
  0x1e   :  { %p4684_p1 = pnand %p4683_p0, %p4677_p11 }
  0x20   :  { %4687 = shalt.err (!%p4684_p1)
}
  0x21   :  { %33 = dma.hbm_to_vmem [thread:$0]  %s4856_s2, 384, %s31_s27, [#allocation5]  }
  0x22   :  { %4688 = dma.done.wait [#allocation3], 55296  }
  0x23   :  { %4689 = vsyncadd [#allocation3], 4294912000 }
  0x24   :  { %4690 = dma.done.wait [#allocation5], 384  }
  0x25   :  { %4691 = vsyncadd [#allocation5], 4294966912  ;;  %v4126_v0 = vld [vmem:[#allocation2 + $0x4] ss:$12 sps:$4 sm:$0xff]   ;;  %v4128_v1 = vld [vmem:[#allocation2] ss:$12 sps:$4 sm:$0xff]  }
  0x26   :  { %722 = vmatprep.subr.bf16.mxu0 %v4126_v0  ;;  %v4129_v2 = vld [vmem:[#allocation2 + $0x1c] ss:$12 sps:$4 sm:$0xff]   ;;  %v4131_v3 = vld [vmem:[#allocation2 + $0x18] ss:$12 sps:$4 sm:$0xff]   ;;  %v4132_v4 = vld [vmem:[#allocation2 + $0x34] ss:$12 sps:$4 sm:$0xff]  }
  0x27   :  { %723 = vmatpush1.bf16.msra.mxu0 %v4128_v1  ;;  %v4134_v5 = vld [vmem:[#allocation2 + $0x30] ss:$12 sps:$4 sm:$0xff]   ;;  %v4135_v6 = vld [vmem:[#allocation2 + $0x4c] ss:$12 sps:$4 sm:$0xff]   ;;  %v4137_v7 = vld [vmem:[#allocation2 + $0x48] ss:$12 sps:$4 sm:$0xff]  }
  0x28   :  { %724 = vmatprep.subr.bf16.mxu0 %v4129_v2  ;;  %v4138_v8 = vld [vmem:[#allocation2 + $0x64] ss:$12 sps:$4 sm:$0xff]   ;;  %v4140_v9 = vld [vmem:[#allocation2 + $0x60] ss:$12 sps:$4 sm:$0xff]   ;;  %v4141_v10 = vld [vmem:[#allocation2 + $0x7c] ss:$12 sps:$4 sm:$0xff]  }
  0x29   :  { %v4143_v11 = vld [vmem:[#allocation2 + $0x78] ss:$12 sps:$4 sm:$0xff]   ;;  %v4144_v12 = vld [vmem:[#allocation2 + $0x94] ss:$12 sps:$4 sm:$0xff]   ;;  %v4146_v13 = vld [vmem:[#allocation2 + $0x90] ss:$12 sps:$4 sm:$0xff]  }
  0x2a   :  { %v4174_v14 = vld [vmem:[#allocation2 + $0xc8] ss:$12 sps:$4 sm:$0xff]   ;;  %v4147_v16 = vld [vmem:[#allocation2 + $0xac] ss:$12 sps:$4 sm:$0xff]   ;;  %v4150_v21 = vld [vmem:[#allocation2 + $0xc4] ss:$12 sps:$4 sm:$0xff]  }
  0x2b   :  { %725 = vmatpush1.bf16.msra.mxu0 %v4131_v3  ;;  %v4175_v15 = vld [vmem:[#allocation2 + $0x8] ss:$12 sps:$4 sm:$0xff]   ;;  %3781 = vmatprep.subr.bf16.mxu1 %v4174_v14  ;;  %v4182_v19 = vld [vmem:[#allocation2 + $0xe0] ss:$12 sps:$4 sm:$0xff]   ;;  %v4187_v23 = vld [vmem:[#allocation2 + $0xf8] ss:$12 sps:$4 sm:$0xff]  }
  0x2c   :  { %726 = vmatprep.subr.bf16.mxu0 %v4132_v4  ;;  %v4178_v17 = vld [vmem:[%s4854_s0 + $0x4] ss:$16 sps:$4 sm:$0xff]   ;;  %3782 = vmatpush3.bf16.msra.mxu1 %v4175_v15  ;;  %v4183_v20 = vld [vmem:[#allocation2 + $0x20] ss:$12 sps:$4 sm:$0xff]   ;;  %v4153_v25 = vld [vmem:[#allocation2 + $0xdc] ss:$12 sps:$4 sm:$0xff]  }
  0x2d   :  { %v4149_v18 = vld [vmem:[#allocation2 + $0xa8] ss:$12 sps:$4 sm:$0xff]   ;;  %754 = vmatprep.mubr.bf16.mxu0 %v4178_v17  ;;  %840 = vmatprep.mubr.bf16.mxu1 %v4178_v17  ;;  %v4152_v22 = vld [vmem:[#allocation2 + $0xc0] ss:$12 sps:$4 sm:$0xff]   ;;  %v4188_v24 = vld [vmem:[#allocation2 + $0x38] ss:$12 sps:$4 sm:$0xff]  }
  0x2e   :  { %3783 = vmatprep.subr.bf16.mxu1 %v4182_v19  ;;  %v4192_v26 = vld [vmem:[#allocation2 + $0x110] ss:$12 sps:$4 sm:$0xff]   ;;  %v4155_v28 = vld [vmem:[#allocation2 + $0xd8] ss:$12 sps:$4 sm:$0xff]   ;;  %v4156_v29 = vld [vmem:[#allocation2 + $0xf4] ss:$12 sps:$4 sm:$0xff]  }
  0x2f   :  { %727 = vmatpush1.bf16.msra.mxu0 %v4134_v5  ;;  %v4193_v27 = vld [vmem:[#allocation2 + $0x50] ss:$12 sps:$4 sm:$0xff]   ;;  %v4197_v30 = vld [vmem:[#allocation2 + $0x128] ss:$12 sps:$4 sm:$0xff]   ;;  %v4159_v33 = vld [vmem:[#allocation2 + $0x10c] ss:$12 sps:$4 sm:$0xff]  }
  0x30   :  { %728 = vmatprep.subr.bf16.mxu0 %v4135_v6  ;;  %3784 = vmatpush3.bf16.msra.mxu1 %v4183_v20  ;;  %v4198_v31 = vld [vmem:[#allocation2 + $0x68] ss:$12 sps:$4 sm:$0xff]   ;;  %v4158_v32 = vld [vmem:[#allocation2 + $0xf0] ss:$12 sps:$4 sm:$0xff]   ;;  %v4202_v34 = vld [vmem:[#allocation2 + $0x140] ss:$12 sps:$4 sm:$0xff]  }
  0x31   :  { %3785 = vmatprep.subr.bf16.mxu1 %v4187_v23  ;;  %v4203_v35 = vld [vmem:[#allocation2 + $0x80] ss:$12 sps:$4 sm:$0xff]   ;;  %v4161_v36 = vld [vmem:[#allocation2 + $0x108] ss:$12 sps:$4 sm:$0xff]   ;;  %v4207_v37 = vld [vmem:[#allocation2 + $0x158] ss:$12 sps:$4 sm:$0xff]  }
  0x32   :  { %v4162_v38 = vld [vmem:[#allocation2 + $0x124] ss:$12 sps:$4 sm:$0xff]   ;;  %v4164_v41 = vld [vmem:[#allocation2 + $0x120] ss:$12 sps:$4 sm:$0xff]   ;;  %v4165_v42 = vld [vmem:[#allocation2 + $0x13c] ss:$12 sps:$4 sm:$0xff]  }
  0x33   :  { %729 = vmatpush1.bf16.msra.mxu0 %v4137_v7  ;;  %v4208_v39 = vld [vmem:[#allocation2 + $0x98] ss:$12 sps:$4 sm:$0xff]   ;;  %v4212_v40 = vld [vmem:[#allocation2 + $0x170] ss:$12 sps:$4 sm:$0xff]   ;;  %v4217_v44 = vld [vmem:[#allocation2 + $0x248] ss:$12 sps:$4 sm:$0xff]  }
  0x34   :  { %730 = vmatprep.subr.bf16.mxu0 %v4138_v8  ;;  %3786 = vmatpush3.bf16.msra.mxu1 %v4188_v24  ;;  %v4213_v43 = vld [vmem:[#allocation2 + $0xb0] ss:$12 sps:$4 sm:$0xff]   ;;  %v4167_v45 = vld [vmem:[#allocation2 + $0x138] ss:$12 sps:$4 sm:$0xff]   ;;  %v4168_v46 = vld [vmem:[#allocation2 + $0x154] ss:$12 sps:$4 sm:$0xff]  }
  0x35   :  { %3787 = vmatprep.subr.bf16.mxu1 %v4192_v26  ;;  %v4176_v47 = vld [vmem:[%s4854_s0] ss:$16 sps:$4 sm:$0xff]   ;;  %v4218_v48 = vld [vmem:[#allocation2 + $0x188] ss:$12 sps:$4 sm:$0xff]   ;;  %v4171_v51 = vld [vmem:[#allocation2 + $0x16c] ss:$12 sps:$4 sm:$0xff]  }
  0x36   :  { %v4222_v49 = vld [vmem:[#allocation2 + $0x260] ss:$12 sps:$4 sm:$0xff]   ;;  %v4170_v50 = vld [vmem:[#allocation2 + $0x150] ss:$12 sps:$4 sm:$0xff]   ;;  %v4227_v53 = vld [vmem:[#allocation2 + $0x278] ss:$12 sps:$4 sm:$0xff]  }
  0x37   :  { %731 = vmatpush1.bf16.msra.mxu0 %v4140_v9  ;;  %v4223_v52 = vld [vmem:[#allocation2 + $0x1a0] ss:$12 sps:$4 sm:$0xff]   ;;  %v4173_v54 = vld [vmem:[#allocation2 + $0x168] ss:$12 sps:$4 sm:$0xff]   ;;  %v4181_v55 = vld [vmem:[#allocation2 + $0x184] ss:$12 sps:$4 sm:$0xff]  }
  0x38   :  { %732 = vmatprep.subr.bf16.mxu0 %v4141_v10  ;;  %3788 = vmatpush3.bf16.msra.mxu1 %v4193_v27  ;;  %v4228_v56 = vld [vmem:[#allocation2 + $0x1b8] ss:$12 sps:$4 sm:$0xff]   ;;  %v4232_v57 = vld [vmem:[#allocation2 + $0x290] ss:$12 sps:$4 sm:$0xff]   ;;  %v4179_v58 = vld [vmem:[#allocation2 + $0x180] ss:$12 sps:$4 sm:$0xff]  }
  0x39   :  { %3789 = vmatprep.subr.bf16.mxu1 %v4197_v30  ;;  %v4186_v59 = vld [vmem:[#allocation2 + $0x19c] ss:$12 sps:$4 sm:$0xff]   ;;  %v4184_v62 = vld [vmem:[#allocation2 + $0x198] ss:$12 sps:$4 sm:$0xff]   ;;  %v4191_v63 = vld [vmem:[#allocation2 + $0x1b4] ss:$12 sps:$4 sm:$0xff]  }
  0x3a   :  { %v4233_v60 = vld [vmem:[#allocation2 + $0x1d0] ss:$12 sps:$4 sm:$0xff]   ;;  %v4237_v61 = vld [vmem:[#allocation2 + $0x2a8] ss:$12 sps:$4 sm:$0xff]   ;;  %v4242_v1 = vld [vmem:[#allocation2 + $0x2c0] ss:$12 sps:$4 sm:$0xff]  }
  0x3b   :  { %733 = vmatpush1.bf16.msra.mxu0 %v4143_v11  ;;  %v4238_v0 = vld [vmem:[#allocation2 + $0x1e8] ss:$12 sps:$4 sm:$0xff]   ;;  %v4189_v2 = vld [vmem:[#allocation2 + $0x1b0] ss:$12 sps:$4 sm:$0xff]   ;;  %v4196_v3 = vld [vmem:[#allocation2 + $0x1cc] ss:$12 sps:$4 sm:$0xff]  }
  0x3c   :  { %734 = vmatprep.subr.bf16.mxu0 %v4144_v12  ;;  %3790 = vmatpush3.bf16.msra.mxu1 %v4198_v31  ;;  %v4243_v4 = vld [vmem:[#allocation2 + $0x200] ss:$12 sps:$4 sm:$0xff]   ;;  %v4247_v5 = vld [vmem:[#allocation2 + $0x2d8] ss:$12 sps:$4 sm:$0xff]   ;;  %v4194_v6 = vld [vmem:[#allocation2 + $0x1c8] ss:$12 sps:$4 sm:$0xff]  }
  0x3d   :  { %3791 = vmatprep.subr.bf16.mxu1 %v4202_v34  ;;  %v4201_v7 = vld [vmem:[#allocation2 + $0x1e4] ss:$12 sps:$4 sm:$0xff]   ;;  %v4259_v9 = vld [vmem:[%s4854_s0 + $0xc] ss:$16 sps:$4 sm:$0xff]   ;;  %v4755_v17 = vld [vmem:[%s4854_s0 + $0x8] ss:$16 sps:$4 sm:$0xff]  }
  0x3e   :  { %v4248_v8 = vld [vmem:[#allocation2 + $0x218] ss:$12 sps:$4 sm:$0xff]   ;;  %v4252_v10 = vld [vmem:[#allocation2 + $0x2f0] ss:$12 sps:$4 sm:$0xff]   ;;  %v4199_v11 = vld [vmem:[#allocation2 + $0x1e0] ss:$12 sps:$4 sm:$0xff]  }
  0x3f   :  { %735 = vmatpush1.bf16.msra.mxu0 %v4146_v13  ;;  %v4206_v12 = vld [vmem:[#allocation2 + $0x1fc] ss:$12 sps:$4 sm:$0xff]   ;;  %v4262_v14 = vld [vmem:[#allocation2 + $0x304] ss:$12 sps:$4 sm:$0xff]   ;;  %v4268_v23 = vld [vmem:[#allocation2 + $0x334] ss:$12 sps:$4 sm:$0xff]  }
  0x40   :  { %736 = vmatprep.subr.bf16.mxu0 %v4147_v16  ;;  %3792 = vmatpush3.bf16.msra.mxu1 %v4203_v35  ;;  %v4253_v13 = vld [vmem:[#allocation2 + $0x230] ss:$12 sps:$4 sm:$0xff]   ;;  %v4204_v15 = vld [vmem:[#allocation2 + $0x1f8] ss:$12 sps:$4 sm:$0xff]   ;;  %v4211_v16 = vld [vmem:[#allocation2 + $0x214] ss:$12 sps:$4 sm:$0xff]  }
  0x41   :  { %3793 = vmatprep.subr.bf16.mxu1 %v4207_v37  ;;  %v4265_v19 = vld [vmem:[#allocation2 + $0x31c] ss:$12 sps:$4 sm:$0xff]   ;;  %v4219_v26 = vld [vmem:[#allocation2 + $0x240] ss:$12 sps:$4 sm:$0xff]   ;;  %v4274_v31 = vld [vmem:[#allocation2 + $0x364] ss:$12 sps:$4 sm:$0xff]  }
  0x42   :  { %v4209_v20 = vld [vmem:[#allocation2 + $0x210] ss:$12 sps:$4 sm:$0xff]   ;;  %v4214_v24 = vld [vmem:[#allocation2 + $0x228] ss:$12 sps:$4 sm:$0xff]   ;;  %v4272_v34 = vld [vmem:[#allocation2 + $0x360] ss:$12 sps:$4 sm:$0xff]  }
  0x43   :  { %737 = vmatpush1.bf16.msra.mxu0 %v4149_v18  ;;  %v4260_v18 = vld [vmem:[#allocation2 + $0x300] ss:$12 sps:$4 sm:$0xff]   ;;  %v4266_v27 = vld [vmem:[#allocation2 + $0x330] ss:$12 sps:$4 sm:$0xff]   ;;  %v4269_v30 = vld [vmem:[#allocation2 + $0x348] ss:$12 sps:$4 sm:$0xff]  }
  0x44   :  { %738 = vmatprep.subr.bf16.mxu0 %v4150_v21  ;;  %3794 = vmatpush3.bf16.msra.mxu1 %v4208_v39  ;;  %v4216_v21 = vld [vmem:[#allocation2 + $0x22c] ss:$12 sps:$4 sm:$0xff]   ;;  %v4277_v35 = vld [vmem:[#allocation2 + $0x37c] ss:$12 sps:$4 sm:$0xff]   ;;  %v4280_v39 = vld [vmem:[#allocation2 + $0x394] ss:$12 sps:$4 sm:$0xff]  }
  0x45   :  { %3795 = vmatprep.subr.bf16.mxu1 %v4212_v40  ;;  %v4236_v37 = vld [vmem:[#allocation2 + $0x28c] ss:$12 sps:$4 sm:$0xff]   ;;  %v4234_v40 = vld [vmem:[#allocation2 + $0x288] ss:$12 sps:$4 sm:$0xff]   ;;  %vm4698_vm0 = vmmov 0  }
  0x47   :  { %739 = vmatpush1.bf16.msra.mxu0 %v4152_v22  ;;  %v4263_v22 = vld [vmem:[#allocation2 + $0x318] ss:$12 sps:$4 sm:$0xff]  }
  0x48   :  { %740 = vmatprep.subr.bf16.mxu0 %v4153_v25  ;;  %3796 = vmatpush3.bf16.msra.mxu1 %v4213_v43  ;;  %v4221_v25 = vld [vmem:[#allocation2 + $0x244] ss:$12 sps:$4 sm:$0xff]   ;;  %v4283_v43 = vld [vmem:[#allocation2 + $0x3ac] ss:$12 sps:$4 sm:$0xff]  }
  0x49   :  { %3803 = vmatprep.subr.bf16.mxu1 %v4217_v44  ;;  %v4239_v44 = vld [vmem:[#allocation2 + $0x2a0] ss:$12 sps:$4 sm:$0xff]  }
  0x4b   :  { %741 = vmatpush1.bf16.msra.mxu0 %v4155_v28  ;;  %841 = vmatmul.mubr.bf16.vlgmr.msra.gmra.mrb[0].mxu1 %v4176_v47  ;;  %v4226_v28 = vld [vmem:[#allocation2 + $0x25c] ss:$12 sps:$4 sm:$0xff]  }
  0x4c   :  { %742 = vmatprep.subr.bf16.mxu0 %v4156_v29  ;;  %3804 = vmatpush3.bf16.msra.mxu1 %v4218_v48  ;;  %v4271_v29 = vld [vmem:[#allocation2 + $0x34c] ss:$12 sps:$4 sm:$0xff]  }
  0x4d   :  { %3805 = vmatprep.subr.bf16.mxu1 %v4222_v49  ;;  %881 = vmatprep.mubr.bf16.mxu1 %v4259_v9  ;;  %v4244_v48 = vld [vmem:[#allocation2 + $0x2b8] ss:$12 sps:$4 sm:$0xff]   ;;  %v4251_v49 = vld [vmem:[#allocation2 + $0x2d4] ss:$12 sps:$4 sm:$0xff]  }
  0x4f   :  { %743 = vmatpush1.bf16.msra.mxu0 %v4158_v32  ;;  %v4224_v32 = vld [vmem:[#allocation2 + $0x258] ss:$12 sps:$4 sm:$0xff]  }
  0x50   :  { %744 = vmatprep.subr.bf16.mxu0 %v4159_v33  ;;  %3806 = vmatpush3.bf16.msra.mxu1 %v4223_v52  ;;  %v4231_v33 = vld [vmem:[#allocation2 + $0x274] ss:$12 sps:$4 sm:$0xff]   ;;  %v4249_v52 = vld [vmem:[#allocation2 + $0x2d0] ss:$12 sps:$4 sm:$0xff]  }
  0x51   :  { %3807 = vmatprep.subr.bf16.mxu1 %v4227_v53  ;;  %v4256_v53 = vld [vmem:[#allocation2 + $0x2ec] ss:$12 sps:$4 sm:$0xff]  }
  0x53   :  { %745 = vmatpush1.bf16.msra.mxu0 %v4161_v36  ;;  %v4229_v36 = vld [vmem:[#allocation2 + $0x270] ss:$12 sps:$4 sm:$0xff]  }
  0x54   :  { %746 = vmatprep.subr.bf16.mxu0 %v4162_v38  ;;  %3808 = vmatpush3.bf16.msra.mxu1 %v4228_v56  ;;  %v4275_v38 = vld [vmem:[#allocation2 + $0x378] ss:$12 sps:$4 sm:$0xff]   ;;  %v4287_v56 = vld [vmem:[#allocation2 + $0x3c8] ss:$12 sps:$4 sm:$0xff]  }
  0x55   :  { %3809 = vmatprep.subr.bf16.mxu1 %v4232_v57  ;;  %v4288_v57 = vld [vmem:[#allocation2 + $0x308] ss:$12 sps:$4 sm:$0xff]  }
  0x57   :  { %747 = vmatpush1.bf16.msra.mxu0 %v4164_v41  ;;  %v4241_v41 = vld [vmem:[#allocation2 + $0x2a4] ss:$12 sps:$4 sm:$0xff]  }
  0x58   :  { %748 = vmatprep.subr.bf16.mxu0 %v4165_v42  ;;  %3810 = vmatpush3.bf16.msra.mxu1 %v4233_v60  ;;  %v4278_v42 = vld [vmem:[#allocation2 + $0x390] ss:$12 sps:$4 sm:$0xff]  }
  0x59   :  { %3811 = vmatprep.subr.bf16.mxu1 %v4237_v61  ;;  %v4294_v60 = vld [vmem:[#allocation2 + $0x3f0] ss:$12 sps:$4 sm:$0xff]   ;;  %v4296_v61 = vld [vmem:[#allocation2 + $0x3f4] ss:$12 sps:$4 sm:$0xff]  }
  0x5b   :  { %749 = vmatpush1.bf16.msra.mxu0 %v4167_v45  ;;  %v4246_v45 = vld [vmem:[#allocation2 + $0x2bc] ss:$12 sps:$4 sm:$0xff]  }
  0x5c   :  { %750 = vmatprep.subr.bf16.mxu0 %v4168_v46  ;;  %3812 = vmatpush3.bf16.msra.mxu1 %v4238_v0  ;;  %v4281_v46 = vld [vmem:[#allocation2 + $0x3a8] ss:$12 sps:$4 sm:$0xff]  }
  0x5d   :  { %3813 = vmatprep.subr.bf16.mxu1 %v4242_v1  ;;  %v4299_v0 = vld [vmem:[#allocation2 + $0x408] ss:$12 sps:$4 sm:$0xff]   ;;  %v4301_v1 = vld [vmem:[#allocation2 + $0x40c] ss:$12 sps:$4 sm:$0xff]  }
  0x5f   :  { %751 = vmatpush1.bf16.msra.mxu0 %v4170_v50  ;;  %v4284_v50 = vld [vmem:[#allocation2 + $0x3c0] ss:$12 sps:$4 sm:$0xff]  }
  0x60   :  { %752 = vmatprep.subr.bf16.mxu0 %v4171_v51  ;;  %3814 = vmatpush3.bf16.msra.mxu1 %v4243_v4  ;;  %v4291_v51 = vld [vmem:[#allocation2 + $0x3dc] ss:$12 sps:$4 sm:$0xff]   ;;  %v4306_v4 = vld [vmem:[#allocation2 + $0x424] ss:$12 sps:$4 sm:$0xff]  }
  0x61   :  { %3815 = vmatprep.subr.bf16.mxu1 %v4247_v5  ;;  %v4307_v5 = vld [vmem:[#allocation2 + $0x428] ss:$12 sps:$4 sm:$0xff]  }
  0x63   :  { %753 = vmatpush1.bf16.msra.mxu0 %v4173_v54  ;;  %v4289_v54 = vld [vmem:[#allocation2 + $0x3d8] ss:$12 sps:$4 sm:$0xff]  }
  0x64   :  { %765 = vmatprep.subr.bf16.mxu0 %v4181_v55  ;;  %3816 = vmatpush3.bf16.msra.mxu1 %v4248_v8  ;;  %v4254_v55 = vld [vmem:[#allocation2 + $0x2e8] ss:$12 sps:$4 sm:$0xff]  }
  0x65   :  { %3817 = vmatprep.subr.bf16.mxu1 %v4252_v10  ;;  %v4311_v8 = vld [vmem:[#allocation2 + $0x43c] ss:$12 sps:$4 sm:$0xff]   ;;  %v4309_v10 = vld [vmem:[#allocation2 + $0x438] ss:$12 sps:$4 sm:$0xff]  }
  0x66   :  { %755 = vmatmul.mubr.bf16.vlgmr.msra.gmra.mrb[0].mxu0 %v4176_v47  ;;  %v4286_v47 = vld [vmem:[#allocation2 + $0x3c4] ss:$12 sps:$4 sm:$0xff]  }
  0x67   :  { %766 = vmatpush1.bf16.msra.mxu0 %v4179_v58  ;;  %797 = vmatprep.mubr.bf16.mxu0 %v4259_v9  ;;  %v4292_v58 = vld [vmem:[#allocation2 + $0x3e0] ss:$12 sps:$4 sm:$0xff]  }
  0x68   :  { %767 = vmatprep.subr.bf16.mxu0 %v4186_v59  ;;  %3818 = vmatpush3.bf16.msra.mxu1 %v4253_v13  ;;  %v4293_v59 = vld [vmem:[#allocation2 + $0x320] ss:$12 sps:$4 sm:$0xff]   ;;  %v4317_v13 = vld [vmem:[#allocation2 + $0x458] ss:$12 sps:$4 sm:$0xff]  }
  0x69   :  { %1397 = vmatprep.subr.bf16.mxu1 %v4262_v14  ;;  %v4312_v9 = vld [vmem:[#allocation2 + $0x440] ss:$12 sps:$4 sm:$0xff]   ;;  %v4314_v14 = vld [vmem:[#allocation2 + $0x450] ss:$12 sps:$4 sm:$0xff]  }
  0x6b   :  { %768 = vmatpush1.bf16.msra.mxu0 %v4184_v62  ;;  %882 = vmatmul.mubr.bf16.vlgmr.msra.gmra.mrb[4].mxu1 %v4755_v17  ;;  %v4297_v62 = vld [vmem:[#allocation2 + $0x3f8] ss:$12 sps:$4 sm:$0xff]  }
  0x6c   :  { %769 = vmatprep.subr.bf16.mxu0 %v4191_v63  ;;  %1398 = vmatpush1.bf16.msra.mxu1 %v4260_v18  ;;  %v4298_v63 = vld [vmem:[#allocation2 + $0x338] ss:$12 sps:$4 sm:$0xff]   ;;  %v4319_v18 = vld [vmem:[#allocation2 + $0x468] ss:$12 sps:$4 sm:$0xff]  }
  0x6d   :  { %1399 = vmatprep.subr.bf16.mxu1 %v4265_v19  ;;  %v4323_v19 = vld [vmem:[#allocation2 + $0x3b0] ss:$12 sps:$4 sm:$0xff]  }
  0x6f   :  { %770 = vmatpush1.bf16.msra.mxu0 %v4189_v2  ;;  %v4302_v2 = vld [vmem:[#allocation2 + $0x410] ss:$12 sps:$4 sm:$0xff]  }
  0x70   :  { %771 = vmatprep.subr.bf16.mxu0 %v4196_v3  ;;  %1400 = vmatpush1.bf16.msra.mxu1 %v4263_v22  ;;  %v4303_v3 = vld [vmem:[#allocation2 + $0x350] ss:$12 sps:$4 sm:$0xff]  }
  0x71   :  { %1401 = vmatprep.subr.bf16.mxu1 %v4268_v23 }
  0x73   :  { %772 = vmatpush1.bf16.msra.mxu0 %v4194_v6  ;;  %v4304_v6 = vld [vmem:[#allocation2 + $0x420] ss:$12 sps:$4 sm:$0xff]  }
  0x74   :  { %773 = vmatprep.subr.bf16.mxu0 %v4201_v7  ;;  %1402 = vmatpush1.bf16.msra.mxu1 %v4266_v27  ;;  %v4308_v7 = vld [vmem:[#allocation2 + $0x368] ss:$12 sps:$4 sm:$0xff]  }
  0x75   :  { %1403 = vmatprep.subr.bf16.mxu1 %v4271_v29 }
  0x77   :  { %774 = vmatpush1.bf16.msra.mxu0 %v4199_v11  ;;  %v4313_v11 = vld [vmem:[#allocation2 + $0x380] ss:$12 sps:$4 sm:$0xff]  }
  0x78   :  { %775 = vmatprep.subr.bf16.mxu0 %v4206_v12  ;;  %1404 = vmatpush1.bf16.msra.mxu1 %v4269_v30  ;;  %v4316_v12 = vld [vmem:[#allocation2 + $0x454] ss:$12 sps:$4 sm:$0xff]  }
  0x79   :  { %1405 = vmatprep.subr.bf16.mxu1 %v4274_v31  ;;  %v173_v31 = vld [vmem:[#allocation4] ss:$8 sm:$0x7] }
  0x7b   :  { %776 = vmatpush1.bf16.msra.mxu0 %v4204_v15  ;;  %v4318_v15 = vld [vmem:[#allocation2 + $0x398] ss:$12 sps:$4 sm:$0xff]  }
  0x7c   :  { %777 = vmatprep.subr.bf16.mxu0 %v4211_v16  ;;  %1406 = vmatpush1.bf16.msra.mxu1 %v4272_v34  ;;  %v4321_v16 = vld [vmem:[#allocation2 + $0x46c] ss:$12 sps:$4 sm:$0xff]  }
  0x7d   :  { %1407 = vmatprep.subr.bf16.mxu1 %v4277_v35 }
  0x7f   :  { %778 = vmatpush1.bf16.msra.mxu0 %v4209_v20  ;;  %v4326_v20 = vld [vmem:[#allocation2 + $0x484] ss:$12 sps:$4 sm:$0xff]  }
  0x80   :  { %779 = vmatprep.subr.bf16.mxu0 %v4216_v21  ;;  %1408 = vmatpush1.bf16.msra.mxu1 %v4275_v38  ;;  %v4696_v21 = vmov 0.0  }
  0x81   :  { %1409 = vmatprep.subr.bf16.mxu1 %v4280_v39 }
  0x83   :  { %780 = vmatpush1.bf16.msra.mxu0 %v4214_v24 }
  0x84   :  { %781 = vmatprep.subr.bf16.mxu0 %v4221_v25  ;;  %1410 = vmatpush1.bf16.msra.mxu1 %v4278_v42 }
  0x85   :  { %1411 = vmatprep.subr.bf16.mxu1 %v4283_v43 }
  0x87   :  { %782 = vmatpush1.bf16.msra.mxu0 %v4219_v26 }
  0x88   :  { %783 = vmatprep.subr.bf16.mxu0 %v4226_v28  ;;  %1412 = vmatpush1.bf16.msra.mxu1 %v4281_v46  ;;  %v175_v28 = vlaneseq }
  0x89   :  { %1413 = vmatprep.subr.bf16.mxu1 %v4286_v47 }
  0x8a   :  { %v176_v29 = vshrl.u32 %v175_v28, 7  ;;  %v4359_v28 = vld [vmem:[#allocation2 + $0x558] ss:$12 sps:$4 sm:$0xff]  }
  0x8b   :  { %784 = vmatpush1.bf16.msra.mxu0 %v4224_v32 }
  0x8c   :  { %785 = vmatprep.subr.bf16.mxu0 %v4231_v33  ;;  %1414 = vmatpush1.bf16.msra.mxu1 %v4284_v50  ;;  %v4760_v30 = vsub.s32 2, %v176_v29  ;;  %v4765_v46 = vsub.s32 0, %v176_v29  ;;  %v4767_v47 = vsub.s32 1, %v176_v29  ;;  %v4364_v29 = vld [vmem:[#allocation2 + $0x574] ss:$12 sps:$4 sm:$0xff]  }
  0x8d   :  { %1415 = vmatprep.subr.bf16.mxu1 %v4291_v51 }
  0x8e   :  { %v186_v32 = vrot.slane %v173_v31, %v4760_v30 }
  0x8f   :  { %786 = vmatpush1.bf16.msra.mxu0 %v4229_v36 }
  0x90   :  { %787 = vmatprep.subr.bf16.mxu0 %v4236_v37  ;;  %1416 = vmatpush1.bf16.msra.mxu1 %v4289_v54 }
  0x91   :  { %1417 = vmatprep.subr.bf16.mxu1 %v4296_v61 }
  0x93   :  { %788 = vmatpush1.bf16.msra.mxu0 %v4234_v40 }
  0x94   :  { %789 = vmatprep.subr.bf16.mxu0 %v4241_v41  ;;  %1418 = vmatpush1.bf16.msra.mxu1 %v4294_v60 }
  0x95   :  { %1419 = vmatprep.subr.bf16.mxu1 %v4301_v1  ;;  %v4327_v1 = vld [vmem:[#allocation2 + $0x488] ss:$12 sps:$4 sm:$0xff]  }
  0x97   :  { %790 = vmatpush1.bf16.msra.mxu0 %v4239_v44 }
  0x98   :  { %791 = vmatprep.subr.bf16.mxu0 %v4246_v45  ;;  %1420 = vmatpush1.bf16.msra.mxu1 %v4299_v0  ;;  %v4324_v0 = vld [vmem:[#allocation2 + $0x480] ss:$12 sps:$4 sm:$0xff]  }
  0x99   :  { %1421 = vmatprep.subr.bf16.mxu1 %v4306_v4  ;;  %v4331_v4 = vld [vmem:[#allocation2 + $0x4a0] ss:$12 sps:$4 sm:$0xff]  }
  0x9b   :  { %792 = vmatpush1.bf16.msra.mxu0 %v4244_v48  ;;  %v178_v48 = vrot.slane %v173_v31, %v4765_v46 }
  0x9c   :  { %793 = vmatprep.subr.bf16.mxu0 %v4251_v49  ;;  %1422 = vmatpush1.bf16.msra.mxu1 %v4304_v6  ;;  %v182_v49 = vrot.slane %v173_v31, %v4767_v47  ;;  %v4697_v6 = vmov 0   ;;  %v4362_v31 = vld [vmem:[#allocation2 + $0x570] ss:$12 sps:$4 sm:$0xff]  }
  0x9d   :  { %1423 = vmatprep.subr.bf16.mxu1 %v4311_v8  ;;  %v4335_v8 = vld [vmem:[#allocation2 + $0x4b8] ss:$12 sps:$4 sm:$0xff]  }
  0x9f   :  { %794 = vmatpush1.bf16.msra.mxu0 %v4249_v52 }
  0xa0   :  { %795 = vmatprep.subr.bf16.mxu0 %v4256_v53  ;;  %1424 = vmatpush1.bf16.msra.mxu1 %v4309_v10  ;;  %v4336_v10 = vld [vmem:[#allocation2 + $0x4c8] ss:$12 sps:$4 sm:$0xff]  }
  0xa1   :  { %1425 = vmatprep.subr.bf16.mxu1 %v4316_v12  ;;  %v4342_v12 = vld [vmem:[#allocation2 + $0x4e4] ss:$12 sps:$4 sm:$0xff]  }
  0xa3   :  { %796 = vmatpush1.bf16.msra.mxu0 %v4254_v55 }
  0xa4   :  { %3825 = vmatprep.subr.bf16.mxu0 %v4287_v56  ;;  %1426 = vmatpush1.bf16.msra.mxu1 %v4314_v14  ;;  %v4343_v14 = vld [vmem:[#allocation2 + $0x4e8] ss:$12 sps:$4 sm:$0xff]  }
  0xa5   :  { %1427 = vmatprep.subr.bf16.mxu1 %v4321_v16  ;;  %v4344_v16 = vld [vmem:[#allocation2 + $0x4f8] ss:$12 sps:$4 sm:$0xff]  }
  0xa6   :  { %798 = vmatmul.mubr.bf16.vlgmr.msra.gmra.mrb[0].mxu0 %v4755_v17  ;;  %v4322_v17 = vld [vmem:[#allocation2 + $0x470] ss:$12 sps:$4 sm:$0xff]  }
  0xa7   :  { %3826 = vmatpush3.bf16.msra.mxu0 %v4288_v57 }
  0xa8   :  { %3827 = vmatprep.subr.bf16.mxu0 %v4292_v58  ;;  %1428 = vmatpush1.bf16.msra.mxu1 %v4319_v18  ;;  %v4350_v18 = vld [vmem:[#allocation2 + $0x514] ss:$12 sps:$4 sm:$0xff]  }
  0xa9   :  { %1440 = vmatprep.subr.bf16.mxu1 %v4326_v20  ;;  %v4351_v20 = vld [vmem:[#allocation2 + $0x518] ss:$12 sps:$4 sm:$0xff]  }
  0xab   :  { %3828 = vmatpush3.bf16.msra.mxu0 %v4293_v59 }
  0xac   :  { %3829 = vmatprep.subr.bf16.mxu0 %v4297_v62 }
  0xaf   :  { %3830 = vmatpush3.bf16.msra.mxu0 %v4298_v63 }
  0xb0   :  { %3831 = vmatprep.subr.bf16.mxu0 %v4302_v2  ;;  %v4330_v2 = vld [vmem:[#allocation2 + $0x49c] ss:$12 sps:$4 sm:$0xff]  }
  0xb3   :  { %3832 = vmatpush3.bf16.msra.mxu0 %v4303_v3  ;;  %v4328_v3 = vld [vmem:[#allocation2 + $0x498] ss:$12 sps:$4 sm:$0xff]  }
  0xb4   :  { %3833 = vmatprep.subr.bf16.mxu0 %v4307_v5  ;;  %v4334_v5 = vld [vmem:[#allocation2 + $0x4b4] ss:$12 sps:$4 sm:$0xff]  }
  0xb7   :  { %3834 = vmatpush3.bf16.msra.mxu0 %v4308_v7  ;;  %v4332_v7 = vld [vmem:[#allocation2 + $0x4b0] ss:$12 sps:$4 sm:$0xff]  }
  0xb8   :  { %3835 = vmatprep.subr.bf16.mxu0 %v4312_v9  ;;  %v4338_v9 = vld [vmem:[#allocation2 + $0x4cc] ss:$12 sps:$4 sm:$0xff]  }
  0xbb   :  { %3836 = vmatpush3.bf16.msra.mxu0 %v4313_v11  ;;  %v4339_v11 = vld [vmem:[#allocation2 + $0x4d0] ss:$12 sps:$4 sm:$0xff]  }
  0xbc   :  { %3837 = vmatprep.subr.bf16.mxu0 %v4317_v13  ;;  %v4340_v13 = vld [vmem:[#allocation2 + $0x4e0] ss:$12 sps:$4 sm:$0xff]  }
  0xbf   :  { %3838 = vmatpush3.bf16.msra.mxu0 %v4318_v15  ;;  %v4346_v15 = vld [vmem:[#allocation2 + $0x4fc] ss:$12 sps:$4 sm:$0xff]  }
  0xc0   :  { %3839 = vmatprep.subr.bf16.mxu0 %v4322_v17  ;;  %v4347_v17 = vld [vmem:[#allocation2 + $0x500] ss:$12 sps:$4 sm:$0xff]  }
  0xc3   :  { %3840 = vmatpush3.bf16.msra.mxu0 %v4323_v19  ;;  %v4348_v19 = vld [vmem:[#allocation2 + $0x510] ss:$12 sps:$4 sm:$0xff]  }
  0xc4   :  { %3967 = vmatprep.subr.bf16.mxu0 %v4696_v21 }
 0x11e   :  { %v3797_v22 = vpop.f32.mrb[0].mxu1 }
 0x11f   :  { %v3798_v23 = vpop.f32.mrb[1].mxu1 }
 0x120   :  { %v3799_v24 = vadd.f32 %v3798_v23, %v3797_v22  ;;  %v3800_v25 = vpop.f32.mrb[2].mxu1  ;;  %v4354_v22 = vld [vmem:[#allocation2 + $0x52c] ss:$12 sps:$4 sm:$0xff]   ;;  %v4352_v23 = vld [vmem:[#allocation2 + $0x528] ss:$12 sps:$4 sm:$0xff]  }
 0x121   :  { %v3801_v26 = vpop.f32.mrb[3].mxu1 }
 0x122   :  { %v3802_v27 = vadd.f32 %v3801_v26, %v3800_v25  ;;  %v843_v33 = vadd.f32 %v3799_v24, %v186_v32  ;;  %v4355_v24 = vld [vmem:[#allocation2 + $0x530] ss:$12 sps:$4 sm:$0xff]   ;;  %v4356_v26 = vld [vmem:[#allocation2 + $0x540] ss:$12 sps:$4 sm:$0xff]  }
 0x123   :  { %v4358_v25 = vld [vmem:[#allocation2 + $0x544] ss:$12 sps:$4 sm:$0xff]  }
 0x124   :  { %v846_v36 = vadd.f32 %v3802_v27, %v186_v32  ;;  %v4361_v27 = vld [vmem:[#allocation2 + $0x55c] ss:$12 sps:$4 sm:$0xff]   ;;  %v4367_v32 = vld [vmem:[#allocation2 + $0x58c] ss:$12 sps:$4 sm:$0xff]  }
 0x13e   :  { %v3819_v34 = vpop.f32.mrb[4].mxu1 }
 0x13f   :  { %v3820_v35 = vpop.f32.mrb[5].mxu1 }
 0x140   :  { %v3821_v37 = vadd.f32 %v3820_v35, %v3819_v34  ;;  %v3822_v38 = vpop.f32.mrb[6].mxu1  ;;  %v4370_v34 = vld [vmem:[#allocation2 + $0x5a4] ss:$12 sps:$4 sm:$0xff]   ;;  %v4368_v35 = vld [vmem:[#allocation2 + $0x5a0] ss:$12 sps:$4 sm:$0xff]  }
 0x141   :  { %v3823_v39 = vpop.f32.mrb[7].mxu1 }
 0x142   :  { %v884_v40 = vadd.f32 %v3821_v37, %v843_v33  ;;  %v3824_v41 = vadd.f32 %v3823_v39, %v3822_v38  ;;  %v4365_v33 = vld [vmem:[#allocation2 + $0x588] ss:$12 sps:$4 sm:$0xff]  }
 0x143   :  { %v4373_v37 = vld [vmem:[#allocation2 + $0x5bc] ss:$12 sps:$4 sm:$0xff]   ;;  %v4376_v38 = vld [vmem:[#allocation2 + $0x5d4] ss:$12 sps:$4 sm:$0xff]  }
 0x144   :  { %4588 = vtanh.f32 %v884_v40  ;;  %v887_v42 = vadd.f32 %v3824_v41, %v846_v36  ;;  %v4371_v36 = vld [vmem:[#allocation2 + $0x5b8] ss:$12 sps:$4 sm:$0xff]   ;;  %v4383_v39 = vld [vmem:[#allocation2 + $0x608] ss:$12 sps:$4 sm:$0xff]   ;;  %v4374_v41 = vld [vmem:[#allocation2 + $0x5d0] ss:$12 sps:$4 sm:$0xff]  }
 0x145   :  { %v4384_v40 = vld [vmem:[#allocation2 + $0x548] ss:$12 sps:$4 sm:$0xff]  }
 0x146   :  { %4590 = vtanh.f32 %v887_v42  ;;  %v4388_v42 = vld [vmem:[#allocation2 + $0x620] ss:$12 sps:$4 sm:$0xff]  }
 0x14e   :  { %v4589_v43 = vpop.eup %4588 }
 0x150   :  { %v4591_v44 = vpop.eup %4590 }
 0x151   :  { %v4763_v45 = vpack.c.bf16 %v4591_v44, %v4589_v43  ;;  %v4379_v43 = vld [vmem:[#allocation2 + $0x5ec] ss:$12 sps:$4 sm:$0xff]  }
 0x152   :  { %v4389_v44 = vld [vmem:[#allocation2 + $0x560] ss:$12 sps:$4 sm:$0xff]  }
 0x179   :  { %v799_v50 = vpop.f32.mrb[0].mxu0 }
 0x17a   :  { %v4087_v51 = vadd.f32 %v799_v50, %v178_v48  ;;  %v801_v52 = vpop.f32.mrb[1].mxu0  ;;  %v4394_v50 = vld [vmem:[#allocation2 + $0x578] ss:$12 sps:$4 sm:$0xff]  }
 0x17b   :  { %v4088_v53 = vadd.f32 %v801_v52, %v182_v49  ;;  %v803_v54 = vpop.f32.mrb[2].mxu0  ;;  %v4380_v52 = vld [vmem:[#allocation2 + $0x600] ss:$12 sps:$4 sm:$0xff]  }
 0x17c   :  { %4592 = vtanh.f32 %v4087_v51  ;;  %v4089_v55 = vadd.f32 %v803_v54, %v178_v48  ;;  %v805_v56 = vpop.f32.mrb[3].mxu0  ;;  %v4377_v48 = vld [vmem:[#allocation2 + $0x5e8] ss:$12 sps:$4 sm:$0xff]   ;;  %v4398_v51 = vld [vmem:[#allocation2 + $0x650] ss:$12 sps:$4 sm:$0xff]  }
 0x17d   :  { %4594 = vtanh.f32 %v4088_v53  ;;  %v4090_v57 = vadd.f32 %v805_v56, %v182_v49  ;;  %v4382_v49 = vld [vmem:[#allocation2 + $0x604] ss:$12 sps:$4 sm:$0xff]   ;;  %v4387_v53 = vld [vmem:[#allocation2 + $0x61c] ss:$12 sps:$4 sm:$0xff]  }
 0x17e   :  { %4596 = vtanh.f32 %v4089_v55  ;;  %v4385_v54 = vld [vmem:[#allocation2 + $0x618] ss:$12 sps:$4 sm:$0xff]   ;;  %v4392_v55 = vld [vmem:[#allocation2 + $0x634] ss:$12 sps:$4 sm:$0xff]   ;;  %v4390_v56 = vld [vmem:[#allocation2 + $0x630] ss:$12 sps:$4 sm:$0xff]  }
 0x17f   :  { %4598 = vtanh.f32 %v4090_v57  ;;  %v4397_v57 = vld [vmem:[#allocation2 + $0x64c] ss:$12 sps:$4 sm:$0xff]  }
 0x186   :  { %v4593_v58 = vpop.eup %4592 }
 0x187   :  { %v4595_v59 = vpop.eup %4594 }
 0x188   :  { %v4597_v60 = vpop.eup %4596 }
 0x189   :  { %v4599_v61 = vpop.eup %4598  ;;  %v992_v62 = vpack.c.bf16 %v4597_v60, %v4593_v58  ;;  %v4395_v58 = vld [vmem:[#allocation2 + $0x648] ss:$12 sps:$4 sm:$0xff]   ;;  %v4402_v60 = vld [vmem:[#allocation2 + $0x664] ss:$12 sps:$4 sm:$0xff]  }
 0x18a   :  { %v993_v63 = vpack.c.bf16 %v4599_v61, %v4595_v59  ;;  %v4399_v59 = vld [vmem:[#allocation2 + $0x590] ss:$12 sps:$4 sm:$0xff]   ;;  %v4403_v61 = vld [vmem:[#allocation2 + $0x668] ss:$12 sps:$4 sm:$0xff]  }
 0x18c   :  { %1429 = vmatprep.mubr.bf16.mxu1 %v993_v63  ;;  %1515 = vmatprep.mubr.bf16.mxu0 %v993_v63  ;;  %v4404_v63 = vld [vmem:[#allocation2 + $0x5a8] ss:$12 sps:$4 sm:$0xff]  }
 0x18d   :  { %1430 = vmatmul.mubr.bf16.vlgmr.msra.gmra.mrb[8].mxu1 %v992_v62  ;;  %1516 = vmatmul.mubr.bf16.vlgmr.msra.gmra.mrb[4].mxu0 %v992_v62  ;;  %v4400_v62 = vld [vmem:[#allocation2 + $0x660] ss:$12 sps:$4 sm:$0xff]  }
 0x18e   :  { %1441 = vmatpush1.bf16.msra.mxu1 %v4324_v0  ;;  %3968 = vmatpush3.bf16.msra.mxu0 %v4327_v1  ;;  %v4407_v0 = vld [vmem:[#allocation2 + $0x67c] ss:$12 sps:$4 sm:$0xff]   ;;  %v4408_v1 = vld [vmem:[#allocation2 + $0x680] ss:$12 sps:$4 sm:$0xff]  }
 0x18f   :  { %1442 = vmatprep.subr.bf16.mxu1 %v4330_v2  ;;  %3969 = vmatprep.subr.bf16.mxu0 %v4696_v21  ;;  %v4405_v2 = vld [vmem:[#allocation2 + $0x678] ss:$12 sps:$4 sm:$0xff]  }
 0x190   :  { %1472 = vmatprep.mubr.bf16.mxu1 %v4697_v6  ;;  %3983 = vmatprep.mubr.msk.bf16.mxu0 %vm4698_vm0, %v4696_v21 }
 0x192   :  { %1443 = vmatpush1.bf16.msra.mxu1 %v4328_v3  ;;  %3970 = vmatpush3.bf16.msra.mxu0 %v4331_v4  ;;  %v4409_v3 = vld [vmem:[#allocation2 + $0x5c0] ss:$12 sps:$4 sm:$0xff]  }
 0x193   :  { %1444 = vmatprep.subr.bf16.mxu1 %v4334_v5  ;;  %3971 = vmatprep.subr.bf16.mxu0 %v4696_v21  ;;  %v4412_v4 = vld [vmem:[#allocation2 + $0x694] ss:$12 sps:$4 sm:$0xff]   ;;  %v4413_v5 = vld [vmem:[#allocation2 + $0x698] ss:$12 sps:$4 sm:$0xff]  }
 0x196   :  { %1445 = vmatpush1.bf16.msra.mxu1 %v4332_v7  ;;  %3972 = vmatpush3.bf16.msra.mxu0 %v4335_v8  ;;  %v4410_v7 = vld [vmem:[#allocation2 + $0x690] ss:$12 sps:$4 sm:$0xff]   ;;  %v4414_v8 = vld [vmem:[#allocation2 + $0x5d8] ss:$12 sps:$4 sm:$0xff]  }
 0x197   :  { %1446 = vmatprep.subr.bf16.mxu1 %v4338_v9  ;;  %3973 = vmatprep.subr.bf16.mxu0 %v4696_v21  ;;  %v4417_v9 = vld [vmem:[#allocation2 + $0x6ac] ss:$12 sps:$4 sm:$0xff]  }
 0x19a   :  { %1447 = vmatpush1.bf16.msra.mxu1 %v4336_v10  ;;  %3974 = vmatpush3.bf16.msra.mxu0 %v4339_v11  ;;  %v4418_v10 = vld [vmem:[#allocation2 + $0x6b0] ss:$12 sps:$4 sm:$0xff]   ;;  %v4415_v11 = vld [vmem:[#allocation2 + $0x6a8] ss:$12 sps:$4 sm:$0xff]  }
 0x19b   :  { %1448 = vmatprep.subr.bf16.mxu1 %v4342_v12  ;;  %3975 = vmatprep.subr.bf16.mxu0 %v4696_v21  ;;  %v4419_v12 = vld [vmem:[#allocation2 + $0x5f0] ss:$12 sps:$4 sm:$0xff]  }
 0x19e   :  { %1449 = vmatpush1.bf16.msra.mxu1 %v4340_v13  ;;  %3976 = vmatpush3.bf16.msra.mxu0 %v4343_v14  ;;  %v4422_v13 = vld [vmem:[#allocation2 + $0x6c4] ss:$12 sps:$4 sm:$0xff]  }
 0x19f   :  { %1450 = vmatprep.subr.bf16.mxu1 %v4346_v15  ;;  %3977 = vmatprep.subr.bf16.mxu0 %v4696_v21 }
 0x1a2   :  { %1451 = vmatpush1.bf16.msra.mxu1 %v4344_v16  ;;  %3978 = vmatpush3.bf16.msra.mxu0 %v4347_v17 }
 0x1a3   :  { %1452 = vmatprep.subr.bf16.mxu1 %v4350_v18  ;;  %3979 = vmatprep.subr.bf16.mxu0 %v4696_v21 }
 0x1a6   :  { %1453 = vmatpush1.bf16.msra.mxu1 %v4348_v19  ;;  %3980 = vmatpush3.bf16.msra.mxu0 %v4351_v20  ;;  %v996_v20 = vld [vmem:[#allocation4 + $0x1] ss:$8 sm:$0x7] }
 0x1a7   :  { %1454 = vmatprep.subr.bf16.mxu1 %v4354_v22  ;;  %3981 = vmatprep.subr.bf16.mxu0 %v4696_v21  ;;  %v1009_v22 = vrot.slane %v996_v20, %v4760_v30 }
 0x1aa   :  { %1455 = vmatpush1.bf16.msra.mxu1 %v4352_v23  ;;  %3982 = vmatpush3.bf16.msra.mxu0 %v4355_v24  ;;  %v1001_v23 = vrot.slane %v996_v20, %v4765_v46  ;;  %v1005_v24 = vrot.slane %v996_v20, %v4767_v47  ;;  %v4461_v20 = vld [vmem:[#allocation2 + $0x7c8] ss:$12 sps:$4 sm:$0xff]  }
 0x1ab   :  { %2072 = vmatprep.subr.bf16.mxu1 %v4358_v25  ;;  %3856 = vmatprep.subr.bf16.mxu0 %v4383_v39 }
 0x1ad   :  { %1473 = vmatmul.mubr.bf16.vlgmr.msra.gmra.mrb[8].mxu1 %v4763_v45  ;;  %3984 = vmatmul.mubr.bf16.vlgmr.msra.gmra.mrb[8].mxu0 %v4763_v45  ;;  %v4393_v45 = vld [vmem:[#allocation2 + $0x638] ss:$12 sps:$4 sm:$0xff]  }
 0x1ae   :  { %2073 = vmatpush1.bf16.msra.mxu1 %v4356_v26  ;;  %3857 = vmatpush3.bf16.msra.mxu0 %v4384_v40 }
 0x1af   :  { %2074 = vmatprep.subr.bf16.mxu1 %v4361_v27  ;;  %3858 = vmatprep.subr.bf16.mxu0 %v4388_v42 }
 0x1b2   :  { %2075 = vmatpush1.bf16.msra.mxu1 %v4359_v28  ;;  %3859 = vmatpush3.bf16.msra.mxu0 %v4389_v44 }
 0x1b3   :  { %2076 = vmatprep.subr.bf16.mxu1 %v4364_v29  ;;  %3860 = vmatprep.subr.bf16.mxu0 %v4393_v45 }
 0x1b6   :  { %2077 = vmatpush1.bf16.msra.mxu1 %v4362_v31  ;;  %3861 = vmatpush3.bf16.msra.mxu0 %v4394_v50 }
 0x1b7   :  { %2078 = vmatprep.subr.bf16.mxu1 %v4367_v32  ;;  %3862 = vmatprep.subr.bf16.mxu0 %v4398_v51 }
 0x1ba   :  { %2079 = vmatpush1.bf16.msra.mxu1 %v4365_v33  ;;  %3863 = vmatpush3.bf16.msra.mxu0 %v4399_v59  ;;  %v4428_v59 = vld [vmem:[#allocation2 + $0x6f0] ss:$12 sps:$4 sm:$0xff]  }
 0x1bb   :  { %2080 = vmatprep.subr.bf16.mxu1 %v4370_v34  ;;  %3864 = vmatprep.subr.bf16.mxu0 %v4403_v61  ;;  %v4434_v61 = vld [vmem:[#allocation2 + $0x70c] ss:$12 sps:$4 sm:$0xff]  }
 0x1be   :  { %2081 = vmatpush1.bf16.msra.mxu1 %v4368_v35  ;;  %3865 = vmatpush3.bf16.msra.mxu0 %v4404_v63  ;;  %v4435_v63 = vld [vmem:[#allocation2 + $0x710] ss:$12 sps:$4 sm:$0xff]  }
 0x1bf   :  { %2082 = vmatprep.subr.bf16.mxu1 %v4373_v37  ;;  %3866 = vmatprep.subr.bf16.mxu0 %v4408_v1  ;;  %v4436_v1 = vld [vmem:[#allocation2 + $0x720] ss:$12 sps:$4 sm:$0xff]  }
 0x1c2   :  { %2083 = vmatpush1.bf16.msra.mxu1 %v4371_v36  ;;  %3867 = vmatpush3.bf16.msra.mxu0 %v4409_v3  ;;  %v4442_v3 = vld [vmem:[#allocation2 + $0x73c] ss:$12 sps:$4 sm:$0xff]  }
 0x1c3   :  { %2084 = vmatprep.subr.bf16.mxu1 %v4376_v38  ;;  %3868 = vmatprep.subr.bf16.mxu0 %v4413_v5  ;;  %v4443_v5 = vld [vmem:[#allocation2 + $0x740] ss:$12 sps:$4 sm:$0xff]  }
 0x1c6   :  { %2085 = vmatpush1.bf16.msra.mxu1 %v4374_v41  ;;  %3869 = vmatpush3.bf16.msra.mxu0 %v4414_v8  ;;  %v4444_v8 = vld [vmem:[#allocation2 + $0x750] ss:$12 sps:$4 sm:$0xff]  }
 0x1c7   :  { %2086 = vmatprep.subr.bf16.mxu1 %v4379_v43  ;;  %3870 = vmatprep.subr.bf16.mxu0 %v4418_v10  ;;  %v4450_v10 = vld [vmem:[#allocation2 + $0x76c] ss:$12 sps:$4 sm:$0xff]  }
 0x1ca   :  { %2087 = vmatpush1.bf16.msra.mxu1 %v4377_v48  ;;  %3871 = vmatpush3.bf16.msra.mxu0 %v4419_v12  ;;  %v4451_v12 = vld [vmem:[#allocation2 + $0x770] ss:$12 sps:$4 sm:$0xff]  }
 0x1cb   :  { %2088 = vmatprep.subr.bf16.mxu1 %v4382_v49  ;;  %3987 = vmatprep.subr.bf16.mxu0 %v4696_v21 }
 0x1ce   :  { %2089 = vmatpush1.bf16.msra.mxu1 %v4380_v52 }
 0x1cf   :  { %2090 = vmatprep.subr.bf16.mxu1 %v4387_v53  ;;  %v4420_v53 = vld [vmem:[#allocation2 + $0x6c0] ss:$12 sps:$4 sm:$0xff]  }
 0x1d2   :  { %2091 = vmatpush1.bf16.msra.mxu1 %v4385_v54  ;;  %v4423_v54 = vld [vmem:[#allocation2 + $0x6c8] ss:$12 sps:$4 sm:$0xff]  }
 0x1d3   :  { %2092 = vmatprep.subr.bf16.mxu1 %v4392_v55  ;;  %v4426_v55 = vld [vmem:[#allocation2 + $0x6dc] ss:$12 sps:$4 sm:$0xff]  }
 0x1d6   :  { %2093 = vmatpush1.bf16.msra.mxu1 %v4390_v56  ;;  %v4424_v56 = vld [vmem:[#allocation2 + $0x6d8] ss:$12 sps:$4 sm:$0xff]  }
 0x1d7   :  { %2094 = vmatprep.subr.bf16.mxu1 %v4397_v57  ;;  %v4427_v57 = vld [vmem:[#allocation2 + $0x6e0] ss:$12 sps:$4 sm:$0xff]  }
 0x1da   :  { %2095 = vmatpush1.bf16.msra.mxu1 %v4395_v58  ;;  %v4430_v58 = vld [vmem:[#allocation2 + $0x6f4] ss:$12 sps:$4 sm:$0xff]  }
 0x1db   :  { %2096 = vmatprep.subr.bf16.mxu1 %v4402_v60  ;;  %v4431_v60 = vld [vmem:[#allocation2 + $0x6f8] ss:$12 sps:$4 sm:$0xff]  }
 0x1de   :  { %2097 = vmatpush1.bf16.msra.mxu1 %v4400_v62  ;;  %v4432_v62 = vld [vmem:[#allocation2 + $0x708] ss:$12 sps:$4 sm:$0xff]  }
 0x1df   :  { %2098 = vmatprep.subr.bf16.mxu1 %v4407_v0  ;;  %v4438_v0 = vld [vmem:[#allocation2 + $0x724] ss:$12 sps:$4 sm:$0xff]  }
 0x1e2   :  { %2099 = vmatpush1.bf16.msra.mxu1 %v4405_v2  ;;  %v4439_v2 = vld [vmem:[#allocation2 + $0x728] ss:$12 sps:$4 sm:$0xff]  }
 0x1e3   :  { %2100 = vmatprep.subr.bf16.mxu1 %v4412_v4  ;;  %v4440_v4 = vld [vmem:[#allocation2 + $0x738] ss:$12 sps:$4 sm:$0xff]  }
 0x1e6   :  { %2101 = vmatpush1.bf16.msra.mxu1 %v4410_v7  ;;  %v4446_v7 = vld [vmem:[#allocation2 + $0x754] ss:$12 sps:$4 sm:$0xff]  }
 0x1e7   :  { %2102 = vmatprep.subr.bf16.mxu1 %v4417_v9  ;;  %v4447_v9 = vld [vmem:[#allocation2 + $0x758] ss:$12 sps:$4 sm:$0xff]  }
 0x1ea   :  { %2103 = vmatpush1.bf16.msra.mxu1 %v4415_v11  ;;  %v4448_v11 = vld [vmem:[#allocation2 + $0x768] ss:$12 sps:$4 sm:$0xff]  }
 0x1eb   :  { %2115 = vmatprep.subr.bf16.mxu1 %v4422_v13  ;;  %v4454_v13 = vld [vmem:[#allocation2 + $0x784] ss:$12 sps:$4 sm:$0xff]  }
 0x260   :  { %v3841_v14 = vpop.f32.mrb[4].mxu0 }
 0x261   :  { %v3842_v15 = vpop.f32.mrb[5].mxu0 }
 0x262   :  { %v3843_v16 = vadd.f32 %v3842_v15, %v3841_v14  ;;  %v3844_v17 = vpop.f32.mrb[6].mxu0  ;;  %v4452_v14 = vld [vmem:[#allocation2 + $0x780] ss:$12 sps:$4 sm:$0xff]   ;;  %v4457_v15 = vld [vmem:[#allocation2 + $0x79c] ss:$12 sps:$4 sm:$0xff]  }
 0x263   :  { %v3845_v18 = vpop.f32.mrb[7].mxu0 }
 0x264   :  { %v3846_v19 = vadd.f32 %v3845_v18, %v3844_v17  ;;  %v1518_v25 = vadd.f32 %v3843_v16, %v1009_v22  ;;  %v4455_v16 = vld [vmem:[#allocation2 + $0x798] ss:$12 sps:$4 sm:$0xff]   ;;  %v4460_v17 = vld [vmem:[#allocation2 + $0x7b4] ss:$12 sps:$4 sm:$0xff]   ;;  %v4458_v18 = vld [vmem:[#allocation2 + $0x7b0] ss:$12 sps:$4 sm:$0xff]  }
 0x266   :  { %v1521_v33 = vadd.f32 %v3846_v19, %v1009_v22  ;;  %v4463_v19 = vld [vmem:[#allocation2 + $0x7cc] ss:$12 sps:$4 sm:$0xff]   ;;  %v4466_v22 = vld [vmem:[#allocation2 + $0x7e4] ss:$12 sps:$4 sm:$0xff]  }
 0x280   :  { %v1474_v26 = vpop.f32.mrb[8].mxu1  ;;  %v1558_v27 = vpop.f32.mrb[8].mxu0 }
 0x281   :  { %v4091_v28 = vadd.f32 %v1474_v26, %v1001_v23  ;;  %v1559_v29 = vadd.f32 %v1558_v27, %v1518_v25  ;;  %v1476_v31 = vpop.f32.mrb[9].mxu1  ;;  %v3985_v32 = vpop.f32.mrb[9].mxu0  ;;  %v4469_v25 = vld [vmem:[#allocation2 + $0x7fc] ss:$12 sps:$4 sm:$0xff]   ;;  %v4472_v26 = vld [vmem:[#allocation2 + $0x814] ss:$12 sps:$4 sm:$0xff]  }
 0x282   :  { %v4092_v34 = vadd.f32 %v1476_v31, %v1005_v24  ;;  %v1478_v35 = vpop.f32.mrb[10].mxu1  ;;  %v1561_v36 = vpop.f32.mrb[10].mxu0  ;;  %v4479_v27 = vld [vmem:[#allocation2 + $0x848] ss:$12 sps:$4 sm:$0xff]   ;;  %v4484_v31 = vld [vmem:[#allocation2 + $0x860] ss:$12 sps:$4 sm:$0xff]  }
 0x283   :  { %4600 = vtanh.f32 %v4091_v28  ;;  %v4093_v37 = vadd.f32 %v1478_v35, %v1001_v23  ;;  %v1562_v38 = vadd.f32 %v1561_v36, %v1521_v33  ;;  %v1480_v39 = vpop.f32.mrb[11].mxu1  ;;  %v3986_v40 = vpop.f32.mrb[11].mxu0  ;;  %v4464_v23 = vld [vmem:[#allocation2 + $0x7e0] ss:$12 sps:$4 sm:$0xff]   ;;  %v4480_v28 = vld [vmem:[#allocation2 + $0x788] ss:$12 sps:$4 sm:$0xff]  }
 0x284   :  { %4602 = vtanh.f32 %v1559_v29  ;;  %v4094_v41 = vadd.f32 %v1480_v39, %v1005_v24  ;;  %v4467_v24 = vld [vmem:[#allocation2 + $0x7f8] ss:$12 sps:$4 sm:$0xff]   ;;  %v4470_v29 = vld [vmem:[#allocation2 + $0x810] ss:$12 sps:$4 sm:$0xff]   ;;  %v4485_v33 = vld [vmem:[#allocation2 + $0x7a0] ss:$12 sps:$4 sm:$0xff]  }
 0x285   :  { %4604 = vtanh.f32 %v4092_v34  ;;  %v4475_v32 = vld [vmem:[#allocation2 + $0x82c] ss:$12 sps:$4 sm:$0xff]   ;;  %v4473_v35 = vld [vmem:[#allocation2 + $0x828] ss:$12 sps:$4 sm:$0xff]   ;;  %v4478_v36 = vld [vmem:[#allocation2 + $0x844] ss:$12 sps:$4 sm:$0xff]  }
 0x286   :  { %4606 = vtanh.f32 %v4093_v37  ;;  %v4489_v34 = vld [vmem:[#allocation2 + $0x878] ss:$12 sps:$4 sm:$0xff]   ;;  %v4476_v39 = vld [vmem:[#allocation2 + $0x840] ss:$12 sps:$4 sm:$0xff]   ;;  %v4483_v40 = vld [vmem:[#allocation2 + $0x85c] ss:$12 sps:$4 sm:$0xff]  }
 0x287   :  { %4608 = vtanh.f32 %v1562_v38  ;;  %v4490_v37 = vld [vmem:[#allocation2 + $0x7b8] ss:$12 sps:$4 sm:$0xff]   ;;  %v4494_v38 = vld [vmem:[#allocation2 + $0x890] ss:$12 sps:$4 sm:$0xff]  }
 0x288   :  { %4610 = vtanh.f32 %v4094_v41  ;;  %v4481_v41 = vld [vmem:[#allocation2 + $0x858] ss:$12 sps:$4 sm:$0xff]  }
 0x28d   :  { %v4601_v42 = vpop.eup %4600 }
 0x28e   :  { %v4603_v43 = vpop.eup %4602 }
 0x28f   :  { %v4605_v44 = vpop.eup %4604 }
 0x290   :  { %v4607_v45 = vpop.eup %4606 }
 0x291   :  { %v4609_v48 = vpop.eup %4608  ;;  %v1667_v49 = vpack.c.bf16 %v4607_v45, %v4601_v42  ;;  %v4488_v42 = vld [vmem:[#allocation2 + $0x874] ss:$12 sps:$4 sm:$0xff]  }
 0x292   :  { %v4611_v50 = vpop.eup %4610  ;;  %v4787_v51 = vpack.c.bf16 %v4609_v48, %v4603_v43  ;;  %v4486_v43 = vld [vmem:[#allocation2 + $0x870] ss:$12 sps:$4 sm:$0xff]   ;;  %v4491_v45 = vld [vmem:[#allocation2 + $0x888] ss:$12 sps:$4 sm:$0xff]  }
 0x293   :  { %v1668_v52 = vpack.c.bf16 %v4611_v50, %v4605_v44  ;;  %v4493_v44 = vld [vmem:[#allocation2 + $0x88c] ss:$12 sps:$4 sm:$0xff]   ;;  %v4495_v48 = vld [vmem:[#allocation2 + $0x7d0] ss:$12 sps:$4 sm:$0xff]   ;;  %v4499_v50 = vld [vmem:[#allocation2 + $0x8a8] ss:$12 sps:$4 sm:$0xff]  }
 0x295   :  { %2104 = vmatprep.mubr.bf16.mxu1 %v1668_v52  ;;  %2190 = vmatprep.mubr.bf16.mxu0 %v1668_v52  ;;  %v4500_v52 = vld [vmem:[#allocation2 + $0x7e8] ss:$12 sps:$4 sm:$0xff]  }
 0x296   :  { %2105 = vmatmul.mubr.bf16.vlgmr.msra.gmra.mrb[12].mxu1 %v1667_v49  ;;  %2191 = vmatmul.mubr.bf16.vlgmr.msra.gmra.mrb[12].mxu0 %v1667_v49  ;;  %v4498_v49 = vld [vmem:[#allocation2 + $0x8a4] ss:$12 sps:$4 sm:$0xff]  }
 0x297   :  { %2116 = vmatpush1.bf16.msra.mxu1 %v4420_v53  ;;  %3988 = vmatpush3.bf16.msra.mxu0 %v4423_v54  ;;  %v4503_v53 = vld [vmem:[#allocation2 + $0x8bc] ss:$12 sps:$4 sm:$0xff]   ;;  %v4504_v54 = vld [vmem:[#allocation2 + $0x8c0] ss:$12 sps:$4 sm:$0xff]  }
 0x298   :  { %2117 = vmatprep.subr.bf16.mxu1 %v4426_v55  ;;  %3989 = vmatprep.subr.bf16.mxu0 %v4696_v21  ;;  %v4501_v55 = vld [vmem:[#allocation2 + $0x8b8] ss:$12 sps:$4 sm:$0xff]  }
 0x299   :  { %2147 = vmatprep.mubr.bf16.mxu1 %v4697_v6  ;;  %4003 = vmatprep.mubr.msk.bf16.mxu0 %vm4698_vm0, %v4696_v21 }
 0x29b   :  { %2118 = vmatpush1.bf16.msra.mxu1 %v4424_v56  ;;  %3990 = vmatpush3.bf16.msra.mxu0 %v4427_v57  ;;  %v4505_v56 = vld [vmem:[#allocation2 + $0x800] ss:$12 sps:$4 sm:$0xff]  }
 0x29c   :  { %2119 = vmatprep.subr.bf16.mxu1 %v4430_v58  ;;  %3991 = vmatprep.subr.bf16.mxu0 %v4696_v21  ;;  %v4508_v57 = vld [vmem:[#allocation2 + $0x8d4] ss:$12 sps:$4 sm:$0xff]   ;;  %v4509_v58 = vld [vmem:[#allocation2 + $0x8d8] ss:$12 sps:$4 sm:$0xff]  }
 0x29f   :  { %2120 = vmatpush1.bf16.msra.mxu1 %v4428_v59  ;;  %3992 = vmatpush3.bf16.msra.mxu0 %v4431_v60  ;;  %v4506_v59 = vld [vmem:[#allocation2 + $0x8d0] ss:$12 sps:$4 sm:$0xff]   ;;  %v4510_v60 = vld [vmem:[#allocation2 + $0x818] ss:$12 sps:$4 sm:$0xff]  }
 0x2a0   :  { %2121 = vmatprep.subr.bf16.mxu1 %v4434_v61  ;;  %3993 = vmatprep.subr.bf16.mxu0 %v4696_v21  ;;  %v4513_v61 = vld [vmem:[#allocation2 + $0x8ec] ss:$12 sps:$4 sm:$0xff]  }
 0x2a3   :  { %2122 = vmatpush1.bf16.msra.mxu1 %v4432_v62  ;;  %3994 = vmatpush3.bf16.msra.mxu0 %v4435_v63  ;;  %v4514_v62 = vld [vmem:[#allocation2 + $0x8f0] ss:$12 sps:$4 sm:$0xff]   ;;  %v4511_v63 = vld [vmem:[#allocation2 + $0x8e8] ss:$12 sps:$4 sm:$0xff]  }
 0x2a4   :  { %2123 = vmatprep.subr.bf16.mxu1 %v4438_v0  ;;  %3995 = vmatprep.subr.bf16.mxu0 %v4696_v21  ;;  %v4515_v0 = vld [vmem:[#allocation2 + $0x830] ss:$12 sps:$4 sm:$0xff]  }
 0x2a7   :  { %2124 = vmatpush1.bf16.msra.mxu1 %v4436_v1  ;;  %3996 = vmatpush3.bf16.msra.mxu0 %v4439_v2  ;;  %v4518_v1 = vld [vmem:[#allocation2 + $0x904] ss:$12 sps:$4 sm:$0xff]  }
 0x2a8   :  { %2125 = vmatprep.subr.bf16.mxu1 %v4442_v3  ;;  %3997 = vmatprep.subr.bf16.mxu0 %v4696_v21 }
 0x2ab   :  { %2126 = vmatpush1.bf16.msra.mxu1 %v4440_v4  ;;  %3998 = vmatpush3.bf16.msra.mxu0 %v4443_v5 }
 0x2ac   :  { %2127 = vmatprep.subr.bf16.mxu1 %v4446_v7  ;;  %3999 = vmatprep.subr.bf16.mxu0 %v4696_v21 }
 0x2af   :  { %2128 = vmatpush1.bf16.msra.mxu1 %v4444_v8  ;;  %4000 = vmatpush3.bf16.msra.mxu0 %v4447_v9  ;;  %v1671_v9 = vld [vmem:[#allocation4 + $0x2] ss:$8 sm:$0x7] }
 0x2b0   :  { %2129 = vmatprep.subr.bf16.mxu1 %v4450_v10  ;;  %4001 = vmatprep.subr.bf16.mxu0 %v4696_v21  ;;  %v1684_v10 = vrot.slane %v1671_v9, %v4760_v30 }
 0x2b3   :  { %2130 = vmatpush1.bf16.msra.mxu1 %v4448_v11  ;;  %4002 = vmatpush3.bf16.msra.mxu0 %v4451_v12  ;;  %v1676_v11 = vrot.slane %v1671_v9, %v4765_v46  ;;  %v1680_v12 = vrot.slane %v1671_v9, %v4767_v47  ;;  %v4556_v9 = vld [vmem:[#allocation2 + $0x9f0] ss:$12 sps:$4 sm:$0xff]  }
 0x2b4   :  { %2747 = vmatprep.subr.bf16.mxu0 %v4454_v13  ;;  %3887 = vmatprep.subr.bf16.mxu1 %v4479_v27 }
 0x2b6   :  { %2148 = vmatmul.mubr.bf16.vlgmr.msra.gmra.mrb[12].mxu1 %v4787_v51  ;;  %4004 = vmatmul.mubr.bf16.vlgmr.msra.gmra.mrb[16].mxu0 %v4787_v51  ;;  %v4496_v51 = vld [vmem:[#allocation2 + $0x8a0] ss:$12 sps:$4 sm:$0xff]  }
 0x2b7   :  { %2748 = vmatpush1.bf16.msra.mxu0 %v4452_v14  ;;  %3888 = vmatpush3.bf16.msra.mxu1 %v4480_v28 }
 0x2b8   :  { %2749 = vmatprep.subr.bf16.mxu0 %v4457_v15  ;;  %3889 = vmatprep.subr.bf16.mxu1 %v4484_v31 }
 0x2bb   :  { %2750 = vmatpush1.bf16.msra.mxu0 %v4455_v16  ;;  %3890 = vmatpush3.bf16.msra.mxu1 %v4485_v33 }
 0x2bc   :  { %2751 = vmatprep.subr.bf16.mxu0 %v4460_v17  ;;  %3891 = vmatprep.subr.bf16.mxu1 %v4489_v34 }
 0x2bf   :  { %2752 = vmatpush1.bf16.msra.mxu0 %v4458_v18  ;;  %3892 = vmatpush3.bf16.msra.mxu1 %v4490_v37 }
 0x2c0   :  { %2753 = vmatprep.subr.bf16.mxu0 %v4463_v19  ;;  %3893 = vmatprep.subr.bf16.mxu1 %v4494_v38 }
 0x2c3   :  { %2754 = vmatpush1.bf16.msra.mxu0 %v4461_v20  ;;  %3894 = vmatpush3.bf16.msra.mxu1 %v4495_v48  ;;  %v4524_v48 = vld [vmem:[#allocation2 + $0x930] ss:$12 sps:$4 sm:$0xff]  }
 0x2c4   :  { %2755 = vmatprep.subr.bf16.mxu0 %v4466_v22  ;;  %3895 = vmatprep.subr.bf16.mxu1 %v4499_v50  ;;  %v4530_v50 = vld [vmem:[#allocation2 + $0x94c] ss:$12 sps:$4 sm:$0xff]  }
 0x2c7   :  { %2756 = vmatpush1.bf16.msra.mxu0 %v4464_v23  ;;  %3896 = vmatpush3.bf16.msra.mxu1 %v4500_v52  ;;  %v4531_v52 = vld [vmem:[#allocation2 + $0x950] ss:$12 sps:$4 sm:$0xff]  }
 0x2c8   :  { %2757 = vmatprep.subr.bf16.mxu0 %v4469_v25  ;;  %3897 = vmatprep.subr.bf16.mxu1 %v4504_v54  ;;  %v4535_v54 = vld [vmem:[#allocation2 + $0x968] ss:$12 sps:$4 sm:$0xff]  }
 0x2cb   :  { %2758 = vmatpush1.bf16.msra.mxu0 %v4467_v24  ;;  %3898 = vmatpush3.bf16.msra.mxu1 %v4505_v56  ;;  %v4536_v56 = vld [vmem:[#allocation2 + $0x978] ss:$12 sps:$4 sm:$0xff]  }
 0x2cc   :  { %2759 = vmatprep.subr.bf16.mxu0 %v4472_v26  ;;  %3899 = vmatprep.subr.bf16.mxu1 %v4509_v58  ;;  %v4542_v58 = vld [vmem:[#allocation2 + $0x994] ss:$12 sps:$4 sm:$0xff]  }
 0x2cf   :  { %2760 = vmatpush1.bf16.msra.mxu0 %v4470_v29  ;;  %3900 = vmatpush3.bf16.msra.mxu1 %v4510_v60  ;;  %v4543_v60 = vld [vmem:[#allocation2 + $0x998] ss:$12 sps:$4 sm:$0xff]  }
 0x2d0   :  { %2761 = vmatprep.subr.bf16.mxu0 %v4475_v32  ;;  %3901 = vmatprep.subr.bf16.mxu1 %v4514_v62  ;;  %v4544_v62 = vld [vmem:[#allocation2 + $0x9a8] ss:$12 sps:$4 sm:$0xff]  }
 0x2d3   :  { %2762 = vmatpush1.bf16.msra.mxu0 %v4473_v35  ;;  %3902 = vmatpush3.bf16.msra.mxu1 %v4515_v0  ;;  %v4548_v0 = vld [vmem:[#allocation2 + $0xb40] ss:$12 sps:$4 sm:$0xff]  }
 0x2d4   :  { %2763 = vmatprep.subr.bf16.mxu0 %v4478_v36  ;;  %4007 = vmatprep.subr.bf16.mxu1 %v4696_v21 }
 0x2d7   :  { %2764 = vmatpush1.bf16.msra.mxu0 %v4476_v39 }
 0x2d8   :  { %2765 = vmatprep.subr.bf16.mxu0 %v4483_v40  ;;  %v4516_v40 = vld [vmem:[#allocation2 + $0x900] ss:$12 sps:$4 sm:$0xff]  }
 0x2db   :  { %2766 = vmatpush1.bf16.msra.mxu0 %v4481_v41  ;;  %v4519_v41 = vld [vmem:[#allocation2 + $0x908] ss:$12 sps:$4 sm:$0xff]  }
 0x2dc   :  { %2767 = vmatprep.subr.bf16.mxu0 %v4488_v42  ;;  %v4522_v42 = vld [vmem:[#allocation2 + $0x91c] ss:$12 sps:$4 sm:$0xff]  }
 0x2df   :  { %2768 = vmatpush1.bf16.msra.mxu0 %v4486_v43  ;;  %v4520_v43 = vld [vmem:[#allocation2 + $0x918] ss:$12 sps:$4 sm:$0xff]  }
 0x2e0   :  { %2769 = vmatprep.subr.bf16.mxu0 %v4493_v44  ;;  %v4523_v44 = vld [vmem:[#allocation2 + $0x920] ss:$12 sps:$4 sm:$0xff]  }
 0x2e3   :  { %2770 = vmatpush1.bf16.msra.mxu0 %v4491_v45  ;;  %v4526_v45 = vld [vmem:[#allocation2 + $0x934] ss:$12 sps:$4 sm:$0xff]  }
 0x2e4   :  { %2771 = vmatprep.subr.bf16.mxu0 %v4498_v49  ;;  %v4527_v49 = vld [vmem:[#allocation2 + $0x938] ss:$12 sps:$4 sm:$0xff]  }
 0x2e7   :  { %2772 = vmatpush1.bf16.msra.mxu0 %v4496_v51  ;;  %v4528_v51 = vld [vmem:[#allocation2 + $0x948] ss:$12 sps:$4 sm:$0xff]  }
 0x2e8   :  { %2773 = vmatprep.subr.bf16.mxu0 %v4503_v53  ;;  %v4534_v53 = vld [vmem:[#allocation2 + $0x964] ss:$12 sps:$4 sm:$0xff]  }
 0x2eb   :  { %2774 = vmatpush1.bf16.msra.mxu0 %v4501_v55  ;;  %v4538_v55 = vld [vmem:[#allocation2 + $0x97c] ss:$12 sps:$4 sm:$0xff]  }
 0x2ec   :  { %2775 = vmatprep.subr.bf16.mxu0 %v4508_v57  ;;  %v4539_v57 = vld [vmem:[#allocation2 + $0x980] ss:$12 sps:$4 sm:$0xff]  }
 0x2ef   :  { %2776 = vmatpush1.bf16.msra.mxu0 %v4506_v59  ;;  %v4540_v59 = vld [vmem:[#allocation2 + $0x990] ss:$12 sps:$4 sm:$0xff]  }
 0x2f0   :  { %2777 = vmatprep.subr.bf16.mxu0 %v4513_v61  ;;  %v4546_v61 = vld [vmem:[#allocation2 + $0x9ac] ss:$12 sps:$4 sm:$0xff]  }
 0x2f3   :  { %2778 = vmatpush1.bf16.msra.mxu0 %v4511_v63  ;;  %v4547_v63 = vld [vmem:[#allocation2 + $0x9b0] ss:$12 sps:$4 sm:$0xff]  }
 0x2f4   :  { %2790 = vmatprep.subr.bf16.mxu0 %v4518_v1  ;;  %v4549_v1 = vld [vmem:[#allocation2 + $0xa80] ss:$12 sps:$4 sm:$0xff]  }
 0x369   :  { %v3872_v2 = vpop.f32.mrb[12].mxu0 }
 0x36a   :  { %v3873_v3 = vpop.f32.mrb[13].mxu0 }
 0x36b   :  { %v3874_v4 = vadd.f32 %v3873_v3, %v3872_v2  ;;  %v3875_v5 = vpop.f32.mrb[14].mxu0  ;;  %v4550_v2 = vld [vmem:[#allocation2 + $0x9c0] ss:$12 sps:$4 sm:$0xff]   ;;  %v4552_v3 = vld [vmem:[#allocation2 + $0xa98] ss:$12 sps:$4 sm:$0xff]  }
 0x36c   :  { %v3876_v7 = vpop.f32.mrb[15].mxu0 }
 0x36d   :  { %v3877_v8 = vadd.f32 %v3876_v7, %v3875_v5  ;;  %v2193_v13 = vadd.f32 %v3874_v4, %v1684_v10  ;;  %v4551_v4 = vld [vmem:[#allocation2 + $0xb58] ss:$12 sps:$4 sm:$0xff]   ;;  %v4555_v7 = vld [vmem:[#allocation2 + $0xab0] ss:$12 sps:$4 sm:$0xff]  }
 0x36e   :  { %v4553_v5 = vld [vmem:[#allocation2 + $0x9d8] ss:$12 sps:$4 sm:$0xff]  }
 0x36f   :  { %v2196_v20 = vadd.f32 %v3877_v8, %v1684_v10  ;;  %v4554_v8 = vld [vmem:[#allocation2 + $0xb70] ss:$12 sps:$4 sm:$0xff]   ;;  %v4557_v10 = vld [vmem:[#allocation2 + $0xb88] ss:$12 sps:$4 sm:$0xff]  }
 0x389   :  { %v2149_v14 = vpop.f32.mrb[12].mxu1  ;;  %v2233_v15 = vpop.f32.mrb[16].mxu0 }
 0x38a   :  { %v4095_v16 = vadd.f32 %v2149_v14, %v1676_v11  ;;  %v2234_v17 = vadd.f32 %v2233_v15, %v2193_v13  ;;  %v2151_v18 = vpop.f32.mrb[13].mxu1  ;;  %v4005_v19 = vpop.f32.mrb[17].mxu0  ;;  %v4560_v13 = vld [vmem:[#allocation2 + $0xba0] ss:$12 sps:$4 sm:$0xff]  }
 0x38b   :  { %v4096_v22 = vadd.f32 %v2151_v18, %v1680_v12  ;;  %v2153_v23 = vpop.f32.mrb[14].mxu1  ;;  %v2236_v24 = vpop.f32.mrb[18].mxu0  ;;  %v4561_v14 = vld [vmem:[#allocation2 + $0xae0] ss:$12 sps:$4 sm:$0xff]   ;;  %v4565_v18 = vld [vmem:[#allocation2 + $0xa38] ss:$12 sps:$4 sm:$0xff]  }
 0x38c   :  { %4612 = vtanh.f32 %v4095_v16  ;;  %v4097_v25 = vadd.f32 %v2153_v23, %v1676_v11  ;;  %v2237_v26 = vadd.f32 %v2236_v24, %v2196_v20  ;;  %v2155_v27 = vpop.f32.mrb[15].mxu1  ;;  %v4006_v28 = vpop.f32.mrb[19].mxu0  ;;  %v4558_v11 = vld [vmem:[#allocation2 + $0xac8] ss:$12 sps:$4 sm:$0xff]   ;;  %v4562_v15 = vld [vmem:[#allocation2 + $0xa20] ss:$12 sps:$4 sm:$0xff]  }
 0x38d   :  { %4614 = vtanh.f32 %v2234_v17  ;;  %v4098_v29 = vadd.f32 %v2155_v27, %v1680_v12  ;;  %v4559_v12 = vld [vmem:[#allocation2 + $0xa08] ss:$12 sps:$4 sm:$0xff]   ;;  %v4563_v16 = vld [vmem:[#allocation2 + $0xbb8] ss:$12 sps:$4 sm:$0xff]   ;;  %v4566_v19 = vld [vmem:[#allocation2 + $0xbd0] ss:$12 sps:$4 sm:$0xff]  }
 0x38e   :  { %4616 = vtanh.f32 %v4096_v22  ;;  %v4564_v17 = vld [vmem:[#allocation2 + $0xaf8] ss:$12 sps:$4 sm:$0xff]   ;;  %v4567_v20 = vld [vmem:[#allocation2 + $0xb10] ss:$12 sps:$4 sm:$0xff]   ;;  %v4570_v23 = vld [vmem:[#allocation2 + $0xb28] ss:$12 sps:$4 sm:$0xff]  }
 0x38f   :  { %4618 = vtanh.f32 %v4097_v25  ;;  %v4568_v22 = vld [vmem:[#allocation2 + $0xa50] ss:$12 sps:$4 sm:$0xff]   ;;  %v4569_v24 = vld [vmem:[#allocation2 + $0xbe8] ss:$12 sps:$4 sm:$0xff]  }
 0x390   :  { %4620 = vtanh.f32 %v2237_v26  ;;  %v4571_v25 = vld [vmem:[#allocation2 + $0xa68] ss:$12 sps:$4 sm:$0xff]  }
 0x391   :  { %4622 = vtanh.f32 %v4098_v29 }
 0x396   :  { %v4613_v31 = vpop.eup %4612 }
 0x397   :  { %v4615_v32 = vpop.eup %4614 }
 0x398   :  { %v4617_v33 = vpop.eup %4616 }
 0x399   :  { %v4619_v34 = vpop.eup %4618 }
 0x39a   :  { %v4621_v35 = vpop.eup %4620  ;;  %v2342_v36 = vpack.c.bf16 %v4619_v34, %v4613_v31 }
 0x39b   :  { %v4623_v37 = vpop.eup %4622  ;;  %v2344_v38 = vpack.c.bf16 %v4621_v35, %v4615_v32 }
 0x39c   :  { %v2343_v39 = vpack.c.bf16 %v4623_v37, %v4617_v33  ;;  %v2346_v33 = vld [vmem:[#allocation4 + $0x3] ss:$8 sm:$0x7] }
 0x39d   :  { %v2359_v34 = vrot.slane %v2346_v33, %v4760_v30  ;;  %v2351_v35 = vrot.slane %v2346_v33, %v4765_v46 }
 0x39e   :  { %2779 = vmatprep.mubr.bf16.mxu0 %v2343_v39  ;;  %2865 = vmatprep.mubr.bf16.mxu1 %v2343_v39 }
 0x39f   :  { %2780 = vmatmul.mubr.bf16.vlgmr.msra.gmra.mrb[20].mxu0 %v2342_v36  ;;  %2866 = vmatmul.mubr.bf16.vlgmr.msra.gmra.mrb[16].mxu1 %v2342_v36  ;;  %v2355_v36 = vrot.slane %v2346_v33, %v4767_v47  ;;  %v3218_v33 = vld [vmem:[#allocation4 + $0x5] ss:$0 sm:$0xff] }
 0x3a0   :  { %2791 = vmatpush1.bf16.msra.mxu0 %v4516_v40  ;;  %4008 = vmatpush3.bf16.msra.mxu1 %v4519_v41 }
 0x3a1   :  { %2792 = vmatprep.subr.bf16.mxu0 %v4522_v42  ;;  %4009 = vmatprep.subr.bf16.mxu1 %v4696_v21 }
 0x3a2   :  { %2822 = vmatprep.mubr.bf16.mxu0 %v4697_v6  ;;  %4023 = vmatprep.mubr.msk.bf16.mxu1 %vm4698_vm0, %v4696_v21  ;;  %v4532_v6 = vld [vmem:[#allocation2 + $0x960] ss:$12 sps:$4 sm:$0xff]  }
 0x3a4   :  { %2793 = vmatpush1.bf16.msra.mxu0 %v4520_v43  ;;  %4010 = vmatpush3.bf16.msra.mxu1 %v4523_v44 }
 0x3a5   :  { %2794 = vmatprep.subr.bf16.mxu0 %v4526_v45  ;;  %4011 = vmatprep.subr.bf16.mxu1 %v4696_v21 }
 0x3a8   :  { %2795 = vmatpush1.bf16.msra.mxu0 %v4524_v48  ;;  %4012 = vmatpush3.bf16.msra.mxu1 %v4527_v49 }
 0x3a9   :  { %2796 = vmatprep.subr.bf16.mxu0 %v4530_v50  ;;  %4013 = vmatprep.subr.bf16.mxu1 %v4696_v21 }
 0x3ac   :  { %2797 = vmatpush1.bf16.msra.mxu0 %v4528_v51  ;;  %4014 = vmatpush3.bf16.msra.mxu1 %v4531_v52 }
 0x3ad   :  { %2798 = vmatprep.subr.bf16.mxu0 %v4534_v53  ;;  %4015 = vmatprep.subr.bf16.mxu1 %v4696_v21 }
 0x3b0   :  { %2799 = vmatpush1.bf16.msra.mxu0 %v4532_v6  ;;  %4016 = vmatpush3.bf16.msra.mxu1 %v4535_v54 }
 0x3b1   :  { %2800 = vmatprep.subr.bf16.mxu0 %v4538_v55  ;;  %4017 = vmatprep.subr.bf16.mxu1 %v4696_v21 }
 0x3b4   :  { %2801 = vmatpush1.bf16.msra.mxu0 %v4536_v56  ;;  %4018 = vmatpush3.bf16.msra.mxu1 %v4539_v57 }
 0x3b5   :  { %2802 = vmatprep.subr.bf16.mxu0 %v4542_v58  ;;  %4019 = vmatprep.subr.bf16.mxu1 %v4696_v21 }
 0x3b8   :  { %2803 = vmatpush1.bf16.msra.mxu0 %v4540_v59  ;;  %4020 = vmatpush3.bf16.msra.mxu1 %v4543_v60  ;;  %v4572_v60 = vld [vmem:[#allocation2 + $0xc00] ss:$12 sps:$4 sm:$0xff]  }
 0x3b9   :  { %2804 = vmatprep.subr.bf16.mxu0 %v4546_v61  ;;  %4021 = vmatprep.subr.bf16.mxu1 %v4696_v21  ;;  %v4573_v61 = vld [vmem:[#allocation2 + $0xc18] ss:$12 sps:$4 sm:$0xff]  }
 0x3bc   :  { %2805 = vmatpush1.bf16.msra.mxu0 %v4544_v62  ;;  %4022 = vmatpush3.bf16.msra.mxu1 %v4547_v63  ;;  %v4574_v62 = vld [vmem:[#allocation2 + $0xc30] ss:$12 sps:$4 sm:$0xff]   ;;  %v4575_v63 = vld [vmem:[#allocation2 + $0xc48] ss:$12 sps:$4 sm:$0xff]  }
 0x3bd   :  { %4027 = vmatprep.subr.bf16.mxu0 %v4696_v21  ;;  %3918 = vmatprep.subr.bf16.mxu1 %v4549_v1  ;;  %v4577_v1 = vld [vmem:[#allocation2 + $0xc78] ss:$12 sps:$4 sm:$0xff]  }
 0x3bf   :  { %2823 = vmatmul.mubr.bf16.vlgmr.msra.gmra.mrb[20].mxu0 %v2344_v38  ;;  %4024 = vmatmul.mubr.bf16.vlgmr.msra.gmra.mrb[20].mxu1 %v2344_v38 }
 0x3c0   :  { %4043 = vmatprep.mubr.msk.bf16.mxu0 %vm4698_vm0, %v4696_v21  ;;  %4028 = vmatpush3.bf16.msra.mxu0 %v4548_v0  ;;  %v4576_v0 = vld [vmem:[#allocation2 + $0xc60] ss:$12 sps:$4 sm:$0xff]  }
 0x3c1   :  { %3919 = vmatpush3.bf16.msra.mxu1 %v4550_v2  ;;  %4029 = vmatprep.subr.bf16.mxu0 %v4696_v21  ;;  %v4578_v2 = vld [vmem:[#allocation2 + $0xc90] ss:$12 sps:$4 sm:$0xff]  }
 0x3c2   :  { %3920 = vmatprep.subr.bf16.mxu1 %v4552_v3  ;;  %v4579_v3 = vld [vmem:[#allocation2 + $0xca8] ss:$12 sps:$4 sm:$0xff]  }
 0x3c4   :  { %4030 = vmatpush3.bf16.msra.mxu0 %v4551_v4  ;;  %v4580_v4 = vld [vmem:[#allocation2 + $0xcc0] ss:$12 sps:$4 sm:$0xff]  }
 0x3c5   :  { %3921 = vmatpush3.bf16.msra.mxu1 %v4553_v5  ;;  %4031 = vmatprep.subr.bf16.mxu0 %v4696_v21  ;;  %v4581_v5 = vld [vmem:[#allocation2 + $0xcd8] ss:$12 sps:$4 sm:$0xff]  }
 0x3c6   :  { %3922 = vmatprep.subr.bf16.mxu1 %v4555_v7  ;;  %v4582_v7 = vld [vmem:[#allocation2 + $0xcf0] ss:$12 sps:$4 sm:$0xff]  }
 0x3c8   :  { %4032 = vmatpush3.bf16.msra.mxu0 %v4554_v8  ;;  %v4583_v8 = vld [vmem:[#allocation2 + $0xd08] ss:$12 sps:$4 sm:$0xff]  }
 0x3c9   :  { %3923 = vmatpush3.bf16.msra.mxu1 %v4556_v9  ;;  %4033 = vmatprep.subr.bf16.mxu0 %v4696_v21 }
 0x3ca   :  { %3924 = vmatprep.subr.bf16.mxu1 %v4558_v11 }
 0x3cc   :  { %4034 = vmatpush3.bf16.msra.mxu0 %v4557_v10 }
 0x3cd   :  { %4035 = vmatprep.subr.bf16.mxu0 %v4696_v21  ;;  %3925 = vmatpush3.bf16.msra.mxu1 %v4559_v12 }
 0x3ce   :  { %3926 = vmatprep.subr.bf16.mxu1 %v4561_v14 }
 0x3d0   :  { %4036 = vmatpush3.bf16.msra.mxu0 %v4560_v13  ;;  %v2972_v13 = vld [vmem:[#allocation4 + $0x4] ss:$0 sm:$0xff] }
 0x3d1   :  { %4037 = vmatprep.subr.bf16.mxu0 %v4696_v21  ;;  %3927 = vmatpush3.bf16.msra.mxu1 %v4562_v15 }
 0x3d2   :  { %3928 = vmatprep.subr.bf16.mxu1 %v4564_v17 }
 0x3d4   :  { %4038 = vmatpush3.bf16.msra.mxu0 %v4563_v16 }
 0x3d5   :  { %4039 = vmatprep.subr.bf16.mxu0 %v4696_v21  ;;  %3929 = vmatpush3.bf16.msra.mxu1 %v4565_v18 }
 0x3d6   :  { %3930 = vmatprep.subr.bf16.mxu1 %v4567_v20 }
 0x3d8   :  { %4040 = vmatpush3.bf16.msra.mxu0 %v4566_v19 }
 0x3d9   :  { %4041 = vmatprep.subr.bf16.mxu0 %v4696_v21  ;;  %3931 = vmatpush3.bf16.msra.mxu1 %v4568_v22 }
 0x3da   :  { %3932 = vmatprep.subr.bf16.mxu1 %v4570_v23 }
 0x3dc   :  { %4042 = vmatpush3.bf16.msra.mxu0 %v4569_v24 }
 0x3dd   :  { %4067 = vmatprep.subr.bf16.mxu0 %v4696_v21  ;;  %3933 = vmatpush3.bf16.msra.mxu1 %v4571_v25 }
 0x3de   :  { %4047 = vmatprep.subr.bf16.mxu1 %v4696_v21 }
 0x472   :  { %v3903_v26 = vpop.f32.mrb[16].mxu1 }
 0x473   :  { %v3904_v27 = vpop.f32.mrb[17].mxu1 }
 0x474   :  { %v3905_v28 = vadd.f32 %v3904_v27, %v3903_v26  ;;  %v3906_v29 = vpop.f32.mrb[18].mxu1 }
 0x475   :  { %v3907_v31 = vpop.f32.mrb[19].mxu1 }
 0x476   :  { %v3908_v32 = vadd.f32 %v3907_v31, %v3906_v29  ;;  %v2868_v37 = vadd.f32 %v3905_v28, %v2359_v34  ;;  %v4584_v28 = vld [vmem:[#allocation2 + $0xd20] ss:$12 sps:$4 sm:$0xff]   ;;  %v4585_v29 = vld [vmem:[#allocation2 + $0xd38] ss:$12 sps:$4 sm:$0xff]   ;;  %v4586_v31 = vld [vmem:[#allocation2 + $0xd50] ss:$12 sps:$4 sm:$0xff]  }
 0x478   :  { %v2871_v44 = vadd.f32 %v3908_v32, %v2359_v34  ;;  %v4587_v32 = vld [vmem:[#allocation2 + $0xd68] ss:$12 sps:$4 sm:$0xff]  }
 0x492   :  { %v2824_v38 = vpop.f32.mrb[20].mxu0  ;;  %v2908_v39 = vpop.f32.mrb[20].mxu1 }
 0x493   :  { %v4099_v40 = vadd.f32 %v2824_v38, %v2351_v35  ;;  %v2909_v41 = vadd.f32 %v2908_v39, %v2868_v37  ;;  %v2826_v42 = vpop.f32.mrb[21].mxu0  ;;  %v4025_v43 = vpop.f32.mrb[21].mxu1 }
 0x494   :  { %v4100_v45 = vadd.f32 %v2826_v42, %v2355_v36  ;;  %v2828_v48 = vpop.f32.mrb[22].mxu0  ;;  %v2911_v49 = vpop.f32.mrb[22].mxu1  ;;  %v3327_v43 = vld [vmem:[#allocation4 + $0x6] ss:$0 sm:$0xff] }
 0x495   :  { %4624 = vtanh.f32 %v4099_v40  ;;  %v4101_v50 = vadd.f32 %v2828_v48, %v2351_v35  ;;  %v2912_v51 = vadd.f32 %v2911_v49, %v2871_v44  ;;  %v2830_v52 = vpop.f32.mrb[23].mxu0  ;;  %v4026_v30 = vpop.f32.mrb[23].mxu1 }
 0x496   :  { %4626 = vtanh.f32 %v2909_v41  ;;  %v4102_v46 = vadd.f32 %v2830_v52, %v2355_v36 }
 0x497   :  { %4628 = vtanh.f32 %v4100_v45 }
 0x498   :  { %4630 = vtanh.f32 %v4101_v50 }
 0x499   :  { %4632 = vtanh.f32 %v2912_v51 }
 0x49a   :  { %4634 = vtanh.f32 %v4102_v46 }
 0x49f   :  { %v4625_v47 = vpop.eup %4624 }
 0x4a0   :  { %v4627_v53 = vpop.eup %4626 }
 0x4a1   :  { %v4629_v6 = vpop.eup %4628 }
 0x4a2   :  { %v4631_v54 = vpop.eup %4630 }
 0x4a3   :  { %v4633_v55 = vpop.eup %4632  ;;  %v2969_v56 = vpack.c.bf16 %v4631_v54, %v4625_v47 }
 0x4a4   :  { %v4635_v57 = vpop.eup %4634  ;;  %v2971_v58 = vpack.c.bf16 %v4633_v55, %v4627_v53 }
 0x4a5   :  { %v2970_v59 = vpack.c.bf16 %v4635_v57, %v4629_v6 }
 0x4a6   :  { %4044 = vmatmul.mubr.bf16.vlgmr.msra.gmra.mrb[24].mxu0 %v2971_v58 }
 0x4a7   :  { %3149 = vmatprep.mubr.bf16.mxu1 %v2970_v59  ;;  %4083 = vmatprep.mubr.msk.bf16.mxu0 %vm4698_vm0, %v4696_v21 }
 0x4a8   :  { %3150 = vmatmul.mubr.bf16.vlgmr.msra.gmra.mrb[24].mxu1 %v2969_v56  ;;  %4068 = vmatpush3.bf16.msra.mxu0 %v4580_v4 }
 0x4a9   :  { %4048 = vmatpush3.bf16.msra.mxu1 %v4572_v60  ;;  %4063 = vmatprep.mubr.msk.bf16.mxu1 %vm4698_vm0, %v4696_v21 }
 0x4aa   :  { %4049 = vmatprep.subr.bf16.mxu1 %v4696_v21  ;;  %4069 = vmatprep.subr.bf16.mxu0 %v4696_v21 }
 0x4ac   :  { %4070 = vmatpush3.bf16.msra.mxu0 %v4581_v5 }
 0x4ad   :  { %4050 = vmatpush3.bf16.msra.mxu1 %v4573_v61  ;;  %4071 = vmatprep.subr.bf16.mxu0 %v4696_v21 }
 0x4ae   :  { %4051 = vmatprep.subr.bf16.mxu1 %v4696_v21 }
 0x4b0   :  { %4072 = vmatpush3.bf16.msra.mxu0 %v4582_v7 }
 0x4b1   :  { %4052 = vmatpush3.bf16.msra.mxu1 %v4574_v62  ;;  %4073 = vmatprep.subr.bf16.mxu0 %v4696_v21 }
 0x4b2   :  { %4053 = vmatprep.subr.bf16.mxu1 %v4696_v21 }
 0x4b4   :  { %4074 = vmatpush3.bf16.msra.mxu0 %v4583_v8 }
 0x4b5   :  { %4054 = vmatpush3.bf16.msra.mxu1 %v4575_v63  ;;  %4075 = vmatprep.subr.bf16.mxu0 %v4696_v21 }
 0x4b6   :  { %4055 = vmatprep.subr.bf16.mxu1 %v4696_v21 }
 0x4b8   :  { %4076 = vmatpush3.bf16.msra.mxu0 %v4584_v28 }
 0x4b9   :  { %4056 = vmatpush3.bf16.msra.mxu1 %v4576_v0  ;;  %4077 = vmatprep.subr.bf16.mxu0 %v4696_v21 }
 0x4ba   :  { %4057 = vmatprep.subr.bf16.mxu1 %v4696_v21 }
 0x4bc   :  { %4078 = vmatpush3.bf16.msra.mxu0 %v4585_v29 }
 0x4bd   :  { %4058 = vmatpush3.bf16.msra.mxu1 %v4577_v1  ;;  %4079 = vmatprep.subr.bf16.mxu0 %v4696_v21 }
 0x4be   :  { %4059 = vmatprep.subr.bf16.mxu1 %v4696_v21 }
 0x4c0   :  { %4080 = vmatpush3.bf16.msra.mxu0 %v4586_v31 }
 0x4c1   :  { %4060 = vmatpush3.bf16.msra.mxu1 %v4578_v2  ;;  %4081 = vmatprep.subr.bf16.mxu0 %v4696_v21 }
 0x4c2   :  { %4061 = vmatprep.subr.bf16.mxu1 %v4696_v21 }
 0x4c4   :  { %4082 = vmatpush3.bf16.msra.mxu0 %v4587_v32 }
 0x4c5   :  { %4062 = vmatpush3.bf16.msra.mxu1 %v4579_v3 }
 0x579   :  { %v3192_v9 = vpop.f32.mrb[24].mxu0 }
 0x57a   :  { %v4045_v10 = vpop.f32.mrb[25].mxu0 }
 0x57b   :  { %v3934_v11 = vpop.f32.mrb[24].mxu1  ;;  %v3195_v12 = vpop.f32.mrb[26].mxu0 }
 0x57c   :  { %v3935_v14 = vpop.f32.mrb[25].mxu1  ;;  %v4046_v15 = vpop.f32.mrb[27].mxu0 }
 0x57d   :  { %v3936_v16 = vadd.f32 %v3935_v14, %v3934_v11  ;;  %v3937_v17 = vpop.f32.mrb[26].mxu1 }
 0x57e   :  { %v3938_v18 = vpop.f32.mrb[27].mxu1 }
 0x57f   :  { %v3152_v19 = vadd.f32 %v3936_v16, %v2972_v13  ;;  %v3939_v20 = vadd.f32 %v3938_v18, %v3937_v17 }
 0x581   :  { %v3193_v22 = vadd.f32 %v3192_v9, %v3152_v19  ;;  %v3155_v23 = vadd.f32 %v3939_v20, %v2972_v13 }
 0x583   :  { %v3196_v24 = vadd.f32 %v3195_v12, %v3155_v23  ;;  %4636 = vtanh.f32 %v3193_v22 }
 0x585   :  { %4638 = vtanh.f32 %v3196_v24 }
 0x58d   :  { %v4637_v25 = vpop.eup %4636 }
 0x58f   :  { %v4639_v26 = vpop.eup %4638 }
 0x590   :  { %v3217_v27 = vpack.c.bf16 %v4639_v26, %v4637_v25 }
 0x592   :  { %4064 = vmatmul.mubr.bf16.vlgmr.msra.gmra.mrb[28].mxu1 %v3217_v27 }
 0x665   :  { %v3301_v34 = vpop.f32.mrb[28].mxu1 }
 0x666   :  { %v3302_v35 = vadd.f32 %v3301_v34, %v3218_v33  ;;  %v4065_v36 = vpop.f32.mrb[29].mxu1 }
 0x667   :  { %v3304_v37 = vpop.f32.mrb[30].mxu1 }
 0x668   :  { %v3305_v38 = vadd.f32 %v3304_v37, %v3218_v33  ;;  %v4066_v39 = vpop.f32.mrb[31].mxu1  ;;  %4640 = vtanh.f32 %v3302_v35 }
 0x66a   :  { %4642 = vtanh.f32 %v3305_v38 }
 0x672   :  { %v4641_v40 = vpop.eup %4640 }
 0x674   :  { %v4643_v41 = vpop.eup %4642 }
 0x675   :  { %v3326_v42 = vpack.c.bf16 %v4643_v41, %v4641_v40 }
 0x677   :  { %4084 = vmatmul.mubr.bf16.vlgmr.msra.gmra.mrb[28].mxu0 %v3326_v42 }
 0x74a   :  { %v3410_v44 = vpop.f32.mrb[28].mxu0 }
 0x74b   :  { %v3411_v45 = vadd.f32 %v3410_v44, %v3327_v43  ;;  %v4085_v48 = vpop.f32.mrb[29].mxu0 }
 0x74c   :  { %v3413_v49 = vpop.f32.mrb[30].mxu0 }
 0x74d   :  { %3417 = vst [vmem:[%s4857_s3] sm:$0xff] %v3411_v45  ;;  %v3414_v21 = vadd.f32 %v3413_v49, %v3327_v43  ;;  %v4086_v50 = vpop.f32.mrb[31].mxu0 }
 0x74f   :  { %3418 = vst [vmem:[%s4857_s3 + $0x8] sm:$0xff] %v3414_v21 }
 0x750   :  { %3423 = vsyncpa [#allocation3], 1 }
 0x751   :  { %3424 = vsyncpa [#allocation5], 1 }

</bundles_post_ra>
